<compile_context>
chip_gen: v7x
topology: tpu7x:2x2x1
jax: 0.10.0
libtpu: 0.0.40
codegen_flags: <defaults>
</compile_context>

<pallas_src>
import numpy as np
import jax
import jax.numpy as jnp
from jax import lax
from jax.experimental import pallas as pl
from jax.experimental.pallas import tpu as pltpu

K = 3          # conv2 kernel size (module default k=3)
BN_EPS = 1e-5


def build_block_forward(N, Cin, Cout, H, W, k=K):
    """Builds a jitted forward(x_nchw, w1, g1, b1, w2, g2, b2) for fixed shapes."""
    NC = N * Cin                     # batch folded into sublanes (stage 1)
    HW = H * W                       # unpadded spatial slab (row stride = W)
    Hout, Wout = H - k + 1, W - k + 1
    MAX1 = 2 * W + 2                 # largest 3x3 conv1 tap lane offset
    MAX2 = (k - 1) * W + (k - 1)     # largest kxk conv2 tap lane offset
    LC1 = HW + MAX2                  # conv1/y1 slab lanes per batch
    LX = LC1 + MAX1                  # zero-extended input slab lanes per batch
    LW = (N - 1) * LC1 + HW          # conv2 output slab (batches folded on lanes)
    PAD_F = W + 1                    # front zeros so all tap offsets are >= 0
    PAD_B = LX - PAD_F - HW          # trailing zeros
    cnt1 = float(N * H * W)          # BN1 statistic count
    cnt2 = float(N * Hout * Wout)    # BN2 statistic count
    assert (W & (W - 1)) == 0, "in-kernel column masks assume power-of-two W"

    def kernel(x_ref, w1_ref, g1_ref, b1_ref, w2_ref, g2_ref, b2_ref,
               m2_ref, o_ref):
        # x_ref : (N*Cin, H*W)       raw input, batch folded into sublanes
        # w1_ref: (N*Cin, 9)         depthwise taps, tiled over N
        # g1/b1 : (Cin, 1)           BN1 affine;  g2/b2: (Cout, 1) BN2 affine
        # w2_ref: (Cout, k*k*Cin)    conv2 weights, column = (dy*k+dx)*Cin + ci
        # m2_ref: (1, LW)            BN2 validity mask over the folded slab
        # o_ref : (N*Cout, H*W)      lane-dense conv2 output slab (256 lanes)
        f32 = jnp.float32

        # ---- zero-extended input slab, built in-kernel (no wrapper pad) ----
        xv = x_ref[...]                                        # (NC, HW)
        xb = jnp.concatenate(
            [jnp.zeros((NC, PAD_F), f32), xv, jnp.zeros((NC, PAD_B), f32)],
            axis=1)                                            # (NC, LX)
        # Column masks implement conv1's zero padding along W: the flat
        # row-stride-W layout would otherwise wrap the +/-1 column neighbours.
        lane = lax.broadcasted_iota(jnp.int32, (1, LX), 1)
        col = lane & (W - 1)
        xbL = xb * (col != 0).astype(f32)      # source for dx == 0 taps
        xbR = xb * (col != 1).astype(f32)      # source for dx == 2 taps

        # ---- depthwise 3x3 conv: 9 static lane shifts * per-(n,c) scalar ----
        w1 = w1_ref[...]                                       # (NC, 9)
        acc1 = None
        for dy in range(3):
            for dx in range(3):
                t = dy * 3 + dx
                src = (xbL, xb, xbR)[dx]
                term = src[:, dy * W + dx: dy * W + dx + LC1] * w1[:, t:t + 1]
                acc1 = term if acc1 is None else acc1 + term   # (NC, LC1)

        # ---- fused single-pass BatchNorm2d (batch stats) + ReLU ----
        # Every lane of the aligned [0, HW) prefix is a valid conv1 output,
        # so BN1 needs no mask at all in this layout.
        v1 = acc1[:, :HW]
        s1 = jnp.sum(v1, axis=1, keepdims=True)                # (NC, 1)
        q1 = jnp.sum(v1 * v1, axis=1, keepdims=True)           # (NC, 1)
        s1c, q1c = s1[0:Cin], q1[0:Cin]                        # fold over N
        for n in range(1, N):
            s1c = s1c + s1[n * Cin:(n + 1) * Cin]
            q1c = q1c + q1[n * Cin:(n + 1) * Cin]
        mean1 = s1c * (1.0 / cnt1)
        var1 = jnp.maximum(q1c * (1.0 / cnt1) - mean1 * mean1, 0.0)
        scale1c = g1_ref[...] * lax.rsqrt(var1 + BN_EPS)       # (Cin, 1)
        shift1c = b1_ref[...] - mean1 * scale1c
        scale1 = jnp.concatenate([scale1c] * N, axis=0)        # (NC, 1)
        shift1 = jnp.concatenate([shift1c] * N, axis=0)
        y1 = jnp.maximum(acc1 * scale1 + shift1, 0.0)          # (NC, LC1)

        # ---- k x k conv on the MXU, batches folded into the lane axis ----
        ybat = jnp.concatenate(
            [y1[n * Cin:(n + 1) * Cin, :] for n in range(N)],
            axis=1)                                            # (Cin, N*LC1)
        w2 = w2_ref[...]                                       # (Cout, k*k*Cin)
        acc2 = None
        for t in range(k * k):
            off = (t // k) * W + (t % k)
            d = jnp.dot(w2[:, t * Cin:(t + 1) * Cin],
                        ybat[:, off: off + LW],
                        preferred_element_type=jnp.float32,
                        precision=lax.Precision.HIGHEST)
            acc2 = d if acc2 is None else acc2 + d             # (Cout, LW)

        # ---- fused single-pass BatchNorm2d (batch stats) + ReLU ----
        # TODO(synk): these two masked lane reductions could move onto the idle
        # MXU as (Cout,LW)@(LW,1) mask-column dots to shave a few XLU ops.
        m2 = m2_ref[...]                                       # (1, LW)
        am2 = acc2 * m2                                        # reuse masked prod
        s2 = jnp.sum(am2, axis=1, keepdims=True)               # (Cout, 1)
        q2 = jnp.sum(am2 * acc2, axis=1, keepdims=True)        # (Cout, 1)
        mean2 = s2 * (1.0 / cnt2)
        var2 = jnp.maximum(q2 * (1.0 / cnt2) - mean2 * mean2, 0.0)
        scale2 = g2_ref[...] * lax.rsqrt(var2 + BN_EPS)        # (Cout, 1)
        shift2 = b2_ref[...] - mean2 * scale2
        for n in range(N):
            a = acc2[:, n * LC1: n * LC1 + HW]                 # (Cout, HW)
            o_ref[n * Cout:(n + 1) * Cout, :] = jnp.maximum(
                a * scale2 + shift2, 0.0).astype(o_ref.dtype)

    # BN2 validity mask over the batch-folded conv2 output slab (host constant:
    # lanes n*LC1 + ro*W + co with ro < Hout, co < Wout).
    m2_np = np.zeros((1, LW), np.float32)
    for n in range(N):
        for ro in range(Hout):
            base = n * LC1 + ro * W
            m2_np[0, base:base + Wout] = 1.0
    m2_row = jnp.asarray(m2_np)

    vmem = pl.BlockSpec(memory_space=pltpu.MemorySpace.VMEM)

    @jax.jit
    def forward(x_nchw, w1, g1, b1, w2, g2, b2):
        # NCHW in; the only wrapper-side data ops are metadata-only reshapes
        # plus tiny weight re-layouts (the input padding happens in-kernel).
        xf = x_nchw.reshape(NC, HW)
        w1k = jnp.tile(w1.reshape(9, Cin).T, (N, 1))             # (NC, 9)
        w2k = jnp.transpose(w2, (3, 0, 1, 2)).reshape(Cout, k * k * Cin)
        out = pl.pallas_call(
            kernel,
            out_shape=jax.ShapeDtypeStruct((N * Cout, HW), x_nchw.dtype),
            in_specs=[vmem] * 8,
            out_specs=vmem,
        )(xf, w1k,
          g1.reshape(Cin, 1), b1.reshape(Cin, 1),
          w2k,
          g2.reshape(Cout, 1), b2.reshape(Cout, 1),
          m2_row)
        # (N*Cout, H*W) -> (N, Cout, H, W) is a free reshape; the valid
        # (Hout, Wout) window is a cheap slice.  Result is already NCHW.
        return out.reshape(N, Cout, H, W)[:, :, :Hout, :Wout]

    return forward


def ref_block(x_nchw, w1, g1, b1, w2, g2, b2):
    """Pure-JAX reference (XLA convs) matching PyTorch training-mode forward."""
    x = jnp.transpose(x_nchw, (0, 2, 3, 1))
    Cin = x.shape[-1]
    dw = w1[:, :, None, :]                                     # (3,3,1,Cin)
    y = lax.conv_general_dilated(
        x, dw, (1, 1), ((1, 1), (1, 1)),
        dimension_numbers=("NHWC", "HWIO", "NHWC"),
        feature_group_count=Cin)
    m = jnp.mean(y, axis=(0, 1, 2))
    v = jnp.mean((y - m) ** 2, axis=(0, 1, 2))
    y = jnp.maximum(g1 * (y - m) / jnp.sqrt(v + BN_EPS) + b1, 0.0)
    y = lax.conv_general_dilated(
        y, w2, (1, 1), "VALID",
        dimension_numbers=("NHWC", "HWIO", "NHWC"))
    m = jnp.mean(y, axis=(0, 1, 2))
    v = jnp.mean((y - m) ** 2, axis=(0, 1, 2))
    y = jnp.maximum(g2 * (y - m) / jnp.sqrt(v + BN_EPS) + b2, 0.0)
    return jnp.transpose(y, (0, 3, 1, 2))


if __name__ == "__main__":
    key = jax.random.PRNGKey(0)
    kx, kw1, kw2, kg1, kb1, kg2, kb2 = jax.random.split(key, 7)

    N, Cin, H, W = 2, 4, 16, 16      # in_planes=4
    Cout = 8                         # out_planes=8

    x = jax.random.normal(kx, (N, Cin, H, W), jnp.float32)
    # deterministic "weights" (depthwise as (dy, dx, c); conv2 in HWIO)
    w1 = 0.2 * jax.random.normal(kw1, (3, 3, Cin), jnp.float32)
    w2 = 0.2 * jax.random.normal(kw2, (K, K, Cin, Cout), jnp.float32)
    g1 = 1.0 + 0.1 * jax.random.normal(kg1, (Cin,), jnp.float32)
    b1 = 0.1 * jax.random.normal(kb1, (Cin,), jnp.float32)
    g2 = 1.0 + 0.1 * jax.random.normal(kg2, (Cout,), jnp.float32)
    b2 = 0.1 * jax.random.normal(kb2, (Cout,), jnp.float32)

    block_forward = build_block_forward(N, Cin, Cout, H, W)
    out = jax.block_until_ready(block_forward(x, w1, g1, b1, w2, g2, b2))
    ref = jax.block_until_ready(ref_block(x, w1, g1, b1, w2, g2, b2))

    assert out.shape == (N, Cout, H - K + 1, W - K + 1), out.shape
    np.testing.assert_allclose(np.asarray(out), np.asarray(ref),
                               rtol=1e-3, atol=1e-4)
    print("KERNEL_OK")
</pallas_src>

<mosaic_0001>
module attributes {stable_mosaic.version = 11 : i64} {
  func.func @kernel(%arg0: memref<8x256xf32, #tpu.memory_space<vmem>>, %arg1: memref<8x9xf32, #tpu.memory_space<vmem>>, %arg2: memref<4x1xf32, #tpu.memory_space<vmem>>, %arg3: memref<4x1xf32, #tpu.memory_space<vmem>>, %arg4: memref<8x36xf32, #tpu.memory_space<vmem>>, %arg5: memref<8x1xf32, #tpu.memory_space<vmem>>, %arg6: memref<8x1xf32, #tpu.memory_space<vmem>>, %arg7: memref<1x546xf32, #tpu.memory_space<vmem>>, %arg8: memref<16x256xf32, #tpu.memory_space<vmem>>) attributes {dimension_semantics = [], scalar_prefetch = 0 : i64, scratch_operands = 0 : i64, tpu.core_type = #tpu.core_type<tc>} {
    %c0 = arith.constant 0 : index
    %c0_0 = arith.constant 0 : index
    %0 = vector.load %arg0[%c0, %c0_0] : memref<8x256xf32, #tpu.memory_space<vmem>>, vector<8x256xf32>
    %cst = arith.constant 0.000000e+00 : f32
    %1 = vector.broadcast %cst : f32 to vector<8x17xf32>
    %cst_1 = arith.constant 0.000000e+00 : f32
    %2 = vector.broadcast %cst_1 : f32 to vector<8x51xf32>
    %3 = tpu.concatenate %1, %0, %2 in 1 : vector<8x17xf32>, vector<8x256xf32>, vector<8x51xf32> -> vector<8x324xf32>
    %4 = tpu.iota {dimensions = array<i32: 1>} : vector<1x324xi32>
    %c15_i32 = arith.constant 15 : i32
    %5 = vector.broadcast %c15_i32 : i32 to vector<1x324xi32>
    %6 = arith.andi %4, %5 : vector<1x324xi32>
    %c0_i32 = arith.constant 0 : i32
    %7 = vector.broadcast %c0_i32 : i32 to vector<1x324xi32>
    %8 = arith.cmpi ne, %6, %7 : vector<1x324xi32>
    %9 = arith.extui %8 : vector<1x324xi1> to vector<1x324xi32>
    %10 = arith.sitofp %9 : vector<1x324xi32> to vector<1x324xf32>
    %11 = vector.broadcast %10 : vector<1x324xf32> to vector<8x324xf32>
    %12 = arith.mulf %3, %11 : vector<8x324xf32>
    %c1_i32 = arith.constant 1 : i32
    %13 = vector.broadcast %c1_i32 : i32 to vector<1x324xi32>
    %14 = arith.cmpi ne, %6, %13 : vector<1x324xi32>
    %15 = arith.extui %14 : vector<1x324xi1> to vector<1x324xi32>
    %16 = arith.sitofp %15 : vector<1x324xi32> to vector<1x324xf32>
    %17 = vector.broadcast %16 : vector<1x324xf32> to vector<8x324xf32>
    %18 = arith.mulf %3, %17 : vector<8x324xf32>
    %c0_2 = arith.constant 0 : index
    %c0_3 = arith.constant 0 : index
    %19 = vector.load %arg1[%c0_2, %c0_3] : memref<8x9xf32, #tpu.memory_space<vmem>>, vector<8x9xf32>
    %20 = vector.extract_strided_slice %12 {offsets = [0, 0], sizes = [8, 290], strides = [1, 1]} : vector<8x324xf32> to vector<8x290xf32>
    %21 = vector.extract_strided_slice %19 {offsets = [0, 0], sizes = [8, 1], strides = [1, 1]} : vector<8x9xf32> to vector<8x1xf32>
    %22 = vector.broadcast %21 : vector<8x1xf32> to vector<8x290xf32>
    %23 = arith.mulf %20, %22 : vector<8x290xf32>
    %24 = vector.extract_strided_slice %3 {offsets = [0, 1], sizes = [8, 290], strides = [1, 1]} : vector<8x324xf32> to vector<8x290xf32>
    %25 = vector.extract_strided_slice %19 {offsets = [0, 1], sizes = [8, 1], strides = [1, 1]} : vector<8x9xf32> to vector<8x1xf32>
    %26 = vector.broadcast %25 : vector<8x1xf32> to vector<8x290xf32>
    %27 = arith.mulf %24, %26 : vector<8x290xf32>
    %28 = arith.addf %23, %27 : vector<8x290xf32>
    %29 = vector.extract_strided_slice %18 {offsets = [0, 2], sizes = [8, 290], strides = [1, 1]} : vector<8x324xf32> to vector<8x290xf32>
    %30 = vector.extract_strided_slice %19 {offsets = [0, 2], sizes = [8, 1], strides = [1, 1]} : vector<8x9xf32> to vector<8x1xf32>
    %31 = vector.broadcast %30 : vector<8x1xf32> to vector<8x290xf32>
    %32 = arith.mulf %29, %31 : vector<8x290xf32>
    %33 = arith.addf %28, %32 : vector<8x290xf32>
    %34 = vector.extract_strided_slice %12 {offsets = [0, 16], sizes = [8, 290], strides = [1, 1]} : vector<8x324xf32> to vector<8x290xf32>
    %35 = vector.extract_strided_slice %19 {offsets = [0, 3], sizes = [8, 1], strides = [1, 1]} : vector<8x9xf32> to vector<8x1xf32>
    %36 = vector.broadcast %35 : vector<8x1xf32> to vector<8x290xf32>
    %37 = arith.mulf %34, %36 : vector<8x290xf32>
    %38 = arith.addf %33, %37 : vector<8x290xf32>
    %39 = vector.extract_strided_slice %3 {offsets = [0, 17], sizes = [8, 290], strides = [1, 1]} : vector<8x324xf32> to vector<8x290xf32>
    %40 = vector.extract_strided_slice %19 {offsets = [0, 4], sizes = [8, 1], strides = [1, 1]} : vector<8x9xf32> to vector<8x1xf32>
    %41 = vector.broadcast %40 : vector<8x1xf32> to vector<8x290xf32>
    %42 = arith.mulf %39, %41 : vector<8x290xf32>
    %43 = arith.addf %38, %42 : vector<8x290xf32>
    %44 = vector.extract_strided_slice %18 {offsets = [0, 18], sizes = [8, 290], strides = [1, 1]} : vector<8x324xf32> to vector<8x290xf32>
    %45 = vector.extract_strided_slice %19 {offsets = [0, 5], sizes = [8, 1], strides = [1, 1]} : vector<8x9xf32> to vector<8x1xf32>
    %46 = vector.broadcast %45 : vector<8x1xf32> to vector<8x290xf32>
    %47 = arith.mulf %44, %46 : vector<8x290xf32>
    %48 = arith.addf %43, %47 : vector<8x290xf32>
    %49 = vector.extract_strided_slice %12 {offsets = [0, 32], sizes = [8, 290], strides = [1, 1]} : vector<8x324xf32> to vector<8x290xf32>
    %50 = vector.extract_strided_slice %19 {offsets = [0, 6], sizes = [8, 1], strides = [1, 1]} : vector<8x9xf32> to vector<8x1xf32>
    %51 = vector.broadcast %50 : vector<8x1xf32> to vector<8x290xf32>
    %52 = arith.mulf %49, %51 : vector<8x290xf32>
    %53 = arith.addf %48, %52 : vector<8x290xf32>
    %54 = vector.extract_strided_slice %3 {offsets = [0, 33], sizes = [8, 290], strides = [1, 1]} : vector<8x324xf32> to vector<8x290xf32>
    %55 = vector.extract_strided_slice %19 {offsets = [0, 7], sizes = [8, 1], strides = [1, 1]} : vector<8x9xf32> to vector<8x1xf32>
    %56 = vector.broadcast %55 : vector<8x1xf32> to vector<8x290xf32>
    %57 = arith.mulf %54, %56 : vector<8x290xf32>
    %58 = arith.addf %53, %57 : vector<8x290xf32>
    %59 = vector.extract_strided_slice %18 {offsets = [0, 34], sizes = [8, 290], strides = [1, 1]} : vector<8x324xf32> to vector<8x290xf32>
    %60 = vector.extract_strided_slice %19 {offsets = [0, 8], sizes = [8, 1], strides = [1, 1]} : vector<8x9xf32> to vector<8x1xf32>
    %61 = vector.broadcast %60 : vector<8x1xf32> to vector<8x290xf32>
    %62 = arith.mulf %59, %61 : vector<8x290xf32>
    %63 = arith.addf %58, %62 : vector<8x290xf32>
    %64 = vector.extract_strided_slice %63 {offsets = [0, 0], sizes = [8, 256], strides = [1, 1]} : vector<8x290xf32> to vector<8x256xf32>
    %cst_4 = arith.constant dense<0.000000e+00> : vector<8xf32>
    %65 = vector.multi_reduction <add>, %64, %cst_4 [1] : vector<8x256xf32> to vector<8xf32>
    %66 = vector.shape_cast %65 : vector<8xf32> to vector<8x1xf32>
    %67 = arith.mulf %64, %64 : vector<8x256xf32>
    %cst_5 = arith.constant dense<0.000000e+00> : vector<8xf32>
    %68 = vector.multi_reduction <add>, %67, %cst_5 [1] : vector<8x256xf32> to vector<8xf32>
    %69 = vector.shape_cast %68 : vector<8xf32> to vector<8x1xf32>
    %70 = vector.extract_strided_slice %66 {offsets = [0, 0], sizes = [4, 1], strides = [1, 1]} : vector<8x1xf32> to vector<4x1xf32>
    %71 = vector.extract_strided_slice %69 {offsets = [0, 0], sizes = [4, 1], strides = [1, 1]} : vector<8x1xf32> to vector<4x1xf32>
    %72 = vector.extract_strided_slice %66 {offsets = [4, 0], sizes = [4, 1], strides = [1, 1]} : vector<8x1xf32> to vector<4x1xf32>
    %73 = arith.addf %70, %72 : vector<4x1xf32>
    %74 = vector.extract_strided_slice %69 {offsets = [4, 0], sizes = [4, 1], strides = [1, 1]} : vector<8x1xf32> to vector<4x1xf32>
    %75 = arith.addf %71, %74 : vector<4x1xf32>
    %cst_6 = arith.constant 0.001953125 : f32
    %76 = vector.broadcast %cst_6 : f32 to vector<4x1xf32>
    %77 = arith.mulf %73, %76 : vector<4x1xf32>
    %cst_7 = arith.constant 0.001953125 : f32
    %78 = vector.broadcast %cst_7 : f32 to vector<4x1xf32>
    %79 = arith.mulf %75, %78 : vector<4x1xf32>
    %80 = arith.mulf %77, %77 : vector<4x1xf32>
    %81 = arith.subf %79, %80 : vector<4x1xf32>
    %cst_8 = arith.constant 0.000000e+00 : f32
    %82 = vector.broadcast %cst_8 : f32 to vector<4x1xf32>
    %83 = arith.maximumf %81, %82 : vector<4x1xf32>
    %c0_9 = arith.constant 0 : index
    %c0_10 = arith.constant 0 : index
    %84 = vector.load %arg2[%c0_9, %c0_10] : memref<4x1xf32, #tpu.memory_space<vmem>>, vector<4x1xf32>
    %cst_11 = arith.constant 9.99999974E-6 : f32
    %85 = vector.broadcast %cst_11 : f32 to vector<4x1xf32>
    %86 = arith.addf %83, %85 : vector<4x1xf32>
    %87 = math.rsqrt %86 : vector<4x1xf32>
    %88 = arith.mulf %84, %87 : vector<4x1xf32>
    %c0_12 = arith.constant 0 : index
    %c0_13 = arith.constant 0 : index
    %89 = vector.load %arg3[%c0_12, %c0_13] : memref<4x1xf32, #tpu.memory_space<vmem>>, vector<4x1xf32>
    %90 = arith.mulf %77, %88 : vector<4x1xf32>
    %91 = arith.subf %89, %90 : vector<4x1xf32>
    %92 = tpu.concatenate %88, %88 in 0 : vector<4x1xf32>, vector<4x1xf32> -> vector<8x1xf32>
    %93 = tpu.concatenate %91, %91 in 0 : vector<4x1xf32>, vector<4x1xf32> -> vector<8x1xf32>
    %94 = vector.broadcast %92 : vector<8x1xf32> to vector<8x290xf32>
    %95 = arith.mulf %63, %94 : vector<8x290xf32>
    %96 = vector.broadcast %93 : vector<8x1xf32> to vector<8x290xf32>
    %97 = arith.addf %95, %96 : vector<8x290xf32>
    %cst_14 = arith.constant 0.000000e+00 : f32
    %98 = vector.broadcast %cst_14 : f32 to vector<8x290xf32>
    %99 = arith.maximumf %97, %98 : vector<8x290xf32>
    %100 = vector.extract_strided_slice %99 {offsets = [0, 0], sizes = [4, 290], strides = [1, 1]} : vector<8x290xf32> to vector<4x290xf32>
    %101 = vector.extract_strided_slice %99 {offsets = [4, 0], sizes = [4, 290], strides = [1, 1]} : vector<8x290xf32> to vector<4x290xf32>
    %102 = tpu.concatenate %100, %101 in 1 : vector<4x290xf32>, vector<4x290xf32> -> vector<4x580xf32>
    %c0_15 = arith.constant 0 : index
    %c0_16 = arith.constant 0 : index
    %103 = vector.load %arg4[%c0_15, %c0_16] : memref<8x36xf32, #tpu.memory_space<vmem>>, vector<8x36xf32>
    %104 = vector.extract_strided_slice %103 {offsets = [0, 0], sizes = [8, 4], strides = [1, 1]} : vector<8x36xf32> to vector<8x4xf32>
    %105 = vector.extract_strided_slice %102 {offsets = [0, 0], sizes = [4, 546], strides = [1, 1]} : vector<4x580xf32> to vector<4x546xf32>
    %cst_17 = arith.constant dense<0.000000e+00> : vector<8x546xf32>
    %106 = tpu.matmul %104, %105, %cst_17 {dimension_numbers = #tpu.dot_dimension_numbers<[1], [0], [0], [1], [0, 0, 1, 1], [], []>, precision = #tpu.contract_precision<fp32>} : vector<8x4xf32>, vector<4x546xf32>, vector<8x546xf32> -> vector<8x546xf32>
    %107 = vector.extract_strided_slice %103 {offsets = [0, 4], sizes = [8, 4], strides = [1, 1]} : vector<8x36xf32> to vector<8x4xf32>
    %108 = vector.extract_strided_slice %102 {offsets = [0, 1], sizes = [4, 546], strides = [1, 1]} : vector<4x580xf32> to vector<4x546xf32>
    %cst_18 = arith.constant dense<0.000000e+00> : vector<8x546xf32>
    %109 = tpu.matmul %107, %108, %cst_18 {dimension_numbers = #tpu.dot_dimension_numbers<[1], [0], [0], [1], [0, 0, 1, 1], [], []>, precision = #tpu.contract_precision<fp32>} : vector<8x4xf32>, vector<4x546xf32>, vector<8x546xf32> -> vector<8x546xf32>
    %110 = arith.addf %106, %109 : vector<8x546xf32>
    %111 = vector.extract_strided_slice %103 {offsets = [0, 8], sizes = [8, 4], strides = [1, 1]} : vector<8x36xf32> to vector<8x4xf32>
    %112 = vector.extract_strided_slice %102 {offsets = [0, 2], sizes = [4, 546], strides = [1, 1]} : vector<4x580xf32> to vector<4x546xf32>
    %cst_19 = arith.constant dense<0.000000e+00> : vector<8x546xf32>
    %113 = tpu.matmul %111, %112, %cst_19 {dimension_numbers = #tpu.dot_dimension_numbers<[1], [0], [0], [1], [0, 0, 1, 1], [], []>, precision = #tpu.contract_precision<fp32>} : vector<8x4xf32>, vector<4x546xf32>, vector<8x546xf32> -> vector<8x546xf32>
    %114 = arith.addf %110, %113 : vector<8x546xf32>
    %115 = vector.extract_strided_slice %103 {offsets = [0, 12], sizes = [8, 4], strides = [1, 1]} : vector<8x36xf32> to vector<8x4xf32>
    %116 = vector.extract_strided_slice %102 {offsets = [0, 16], sizes = [4, 546], strides = [1, 1]} : vector<4x580xf32> to vector<4x546xf32>
    %cst_20 = arith.constant dense<0.000000e+00> : vector<8x546xf32>
    %117 = tpu.matmul %115, %116, %cst_20 {dimension_numbers = #tpu.dot_dimension_numbers<[1], [0], [0], [1], [0, 0, 1, 1], [], []>, precision = #tpu.contract_precision<fp32>} : vector<8x4xf32>, vector<4x546xf32>, vector<8x546xf32> -> vector<8x546xf32>
    %118 = arith.addf %114, %117 : vector<8x546xf32>
    %119 = vector.extract_strided_slice %103 {offsets = [0, 16], sizes = [8, 4], strides = [1, 1]} : vector<8x36xf32> to vector<8x4xf32>
    %120 = vector.extract_strided_slice %102 {offsets = [0, 17], sizes = [4, 546], strides = [1, 1]} : vector<4x580xf32> to vector<4x546xf32>
    %cst_21 = arith.constant dense<0.000000e+00> : vector<8x546xf32>
    %121 = tpu.matmul %119, %120, %cst_21 {dimension_numbers = #tpu.dot_dimension_numbers<[1], [0], [0], [1], [0, 0, 1, 1], [], []>, precision = #tpu.contract_precision<fp32>} : vector<8x4xf32>, vector<4x546xf32>, vector<8x546xf32> -> vector<8x546xf32>
    %122 = arith.addf %118, %121 : vector<8x546xf32>
    %123 = vector.extract_strided_slice %103 {offsets = [0, 20], sizes = [8, 4], strides = [1, 1]} : vector<8x36xf32> to vector<8x4xf32>
    %124 = vector.extract_strided_slice %102 {offsets = [0, 18], sizes = [4, 546], strides = [1, 1]} : vector<4x580xf32> to vector<4x546xf32>
    %cst_22 = arith.constant dense<0.000000e+00> : vector<8x546xf32>
    %125 = tpu.matmul %123, %124, %cst_22 {dimension_numbers = #tpu.dot_dimension_numbers<[1], [0], [0], [1], [0, 0, 1, 1], [], []>, precision = #tpu.contract_precision<fp32>} : vector<8x4xf32>, vector<4x546xf32>, vector<8x546xf32> -> vector<8x546xf32>
    %126 = arith.addf %122, %125 : vector<8x546xf32>
    %127 = vector.extract_strided_slice %103 {offsets = [0, 24], sizes = [8, 4], strides = [1, 1]} : vector<8x36xf32> to vector<8x4xf32>
    %128 = vector.extract_strided_slice %102 {offsets = [0, 32], sizes = [4, 546], strides = [1, 1]} : vector<4x580xf32> to vector<4x546xf32>
    %cst_23 = arith.constant dense<0.000000e+00> : vector<8x546xf32>
    %129 = tpu.matmul %127, %128, %cst_23 {dimension_numbers = #tpu.dot_dimension_numbers<[1], [0], [0], [1], [0, 0, 1, 1], [], []>, precision = #tpu.contract_precision<fp32>} : vector<8x4xf32>, vector<4x546xf32>, vector<8x546xf32> -> vector<8x546xf32>
    %130 = arith.addf %126, %129 : vector<8x546xf32>
    %131 = vector.extract_strided_slice %103 {offsets = [0, 28], sizes = [8, 4], strides = [1, 1]} : vector<8x36xf32> to vector<8x4xf32>
    %132 = vector.extract_strided_slice %102 {offsets = [0, 33], sizes = [4, 546], strides = [1, 1]} : vector<4x580xf32> to vector<4x546xf32>
    %cst_24 = arith.constant dense<0.000000e+00> : vector<8x546xf32>
    %133 = tpu.matmul %131, %132, %cst_24 {dimension_numbers = #tpu.dot_dimension_numbers<[1], [0], [0], [1], [0, 0, 1, 1], [], []>, precision = #tpu.contract_precision<fp32>} : vector<8x4xf32>, vector<4x546xf32>, vector<8x546xf32> -> vector<8x546xf32>
    %134 = arith.addf %130, %133 : vector<8x546xf32>
    %135 = vector.extract_strided_slice %103 {offsets = [0, 32], sizes = [8, 4], strides = [1, 1]} : vector<8x36xf32> to vector<8x4xf32>
    %136 = vector.extract_strided_slice %102 {offsets = [0, 34], sizes = [4, 546], strides = [1, 1]} : vector<4x580xf32> to vector<4x546xf32>
    %cst_25 = arith.constant dense<0.000000e+00> : vector<8x546xf32>
    %137 = tpu.matmul %135, %136, %cst_25 {dimension_numbers = #tpu.dot_dimension_numbers<[1], [0], [0], [1], [0, 0, 1, 1], [], []>, precision = #tpu.contract_precision<fp32>} : vector<8x4xf32>, vector<4x546xf32>, vector<8x546xf32> -> vector<8x546xf32>
    %138 = arith.addf %134, %137 : vector<8x546xf32>
    %c0_26 = arith.constant 0 : index
    %c0_27 = arith.constant 0 : index
    %139 = vector.load %arg7[%c0_26, %c0_27] : memref<1x546xf32, #tpu.memory_space<vmem>>, vector<1x546xf32>
    %140 = vector.broadcast %139 : vector<1x546xf32> to vector<8x546xf32>
    %141 = arith.mulf %138, %140 : vector<8x546xf32>
    %cst_28 = arith.constant dense<0.000000e+00> : vector<8xf32>
    %142 = vector.multi_reduction <add>, %141, %cst_28 [1] : vector<8x546xf32> to vector<8xf32>
    %143 = vector.shape_cast %142 : vector<8xf32> to vector<8x1xf32>
    %144 = arith.mulf %141, %138 : vector<8x546xf32>
    %cst_29 = arith.constant dense<0.000000e+00> : vector<8xf32>
    %145 = vector.multi_reduction <add>, %144, %cst_29 [1] : vector<8x546xf32> to vector<8xf32>
    %146 = vector.shape_cast %145 : vector<8xf32> to vector<8x1xf32>
    %cst_30 = arith.constant 0.00255102036 : f32
    %147 = vector.broadcast %cst_30 : f32 to vector<8x1xf32>
    %148 = arith.mulf %143, %147 : vector<8x1xf32>
    %cst_31 = arith.constant 0.00255102036 : f32
    %149 = vector.broadcast %cst_31 : f32 to vector<8x1xf32>
    %150 = arith.mulf %146, %149 : vector<8x1xf32>
    %151 = arith.mulf %148, %148 : vector<8x1xf32>
    %152 = arith.subf %150, %151 : vector<8x1xf32>
    %cst_32 = arith.constant 0.000000e+00 : f32
    %153 = vector.broadcast %cst_32 : f32 to vector<8x1xf32>
    %154 = arith.maximumf %152, %153 : vector<8x1xf32>
    %c0_33 = arith.constant 0 : index
    %c0_34 = arith.constant 0 : index
    %155 = vector.load %arg5[%c0_33, %c0_34] : memref<8x1xf32, #tpu.memory_space<vmem>>, vector<8x1xf32>
    %cst_35 = arith.constant 9.99999974E-6 : f32
    %156 = vector.broadcast %cst_35 : f32 to vector<8x1xf32>
    %157 = arith.addf %154, %156 : vector<8x1xf32>
    %158 = math.rsqrt %157 : vector<8x1xf32>
    %159 = arith.mulf %155, %158 : vector<8x1xf32>
    %c0_36 = arith.constant 0 : index
    %c0_37 = arith.constant 0 : index
    %160 = vector.load %arg6[%c0_36, %c0_37] : memref<8x1xf32, #tpu.memory_space<vmem>>, vector<8x1xf32>
    %161 = arith.mulf %148, %159 : vector<8x1xf32>
    %162 = arith.subf %160, %161 : vector<8x1xf32>
    %163 = vector.extract_strided_slice %138 {offsets = [0, 0], sizes = [8, 256], strides = [1, 1]} : vector<8x546xf32> to vector<8x256xf32>
    %164 = vector.broadcast %159 : vector<8x1xf32> to vector<8x256xf32>
    %165 = arith.mulf %163, %164 : vector<8x256xf32>
    %166 = vector.broadcast %162 : vector<8x1xf32> to vector<8x256xf32>
    %167 = arith.addf %165, %166 : vector<8x256xf32>
    %cst_38 = arith.constant 0.000000e+00 : f32
    %168 = vector.broadcast %cst_38 : f32 to vector<8x256xf32>
    %169 = arith.maximumf %167, %168 : vector<8x256xf32>
    %c0_39 = arith.constant 0 : index
    %c0_40 = arith.constant 0 : index
    %170 = vector.load %arg8[%c0_39, %c0_40] : memref<16x256xf32, #tpu.memory_space<vmem>>, vector<8x256xf32>
    tpu.vector_store %arg8[%c0_39, %c0_40], %169 {strides = array<i32>} : memref<16x256xf32, #tpu.memory_space<vmem>>, vector<8x256xf32>,
    %171 = vector.extract_strided_slice %138 {offsets = [0, 290], sizes = [8, 256], strides = [1, 1]} : vector<8x546xf32> to vector<8x256xf32>
    %172 = vector.broadcast %159 : vector<8x1xf32> to vector<8x256xf32>
    %173 = arith.mulf %171, %172 : vector<8x256xf32>
    %174 = vector.broadcast %162 : vector<8x1xf32> to vector<8x256xf32>
    %175 = arith.addf %173, %174 : vector<8x256xf32>
    %cst_41 = arith.constant 0.000000e+00 : f32
    %176 = vector.broadcast %cst_41 : f32 to vector<8x256xf32>
    %177 = arith.maximumf %175, %176 : vector<8x256xf32>
    %c8 = arith.constant 8 : index
    %c0_42 = arith.constant 0 : index
    %178 = vector.load %arg8[%c8, %c0_42] : memref<16x256xf32, #tpu.memory_space<vmem>>, vector<8x256xf32>
    tpu.vector_store %arg8[%c8, %c0_42], %177 {strides = array<i32>} : memref<16x256xf32, #tpu.memory_space<vmem>>, vector<8x256xf32>,
    return
  }
}

</mosaic_0001>

<bundles_post_ra>
// kernel: forward.1
= control target key start
LH: loop header
LB: loop body
LE: loop exit
PB: predicated region body
PF: predicated region fallthrough
CT: control target
= control target key end

     0   :  { %v13867_v0 = vmov 3   ;;  %v13868_v1 = vmov 1   ;;  %v13869_v4 = vmov 2   ;;  %s13870_s9 = smov 17   ;;  %v13871_v6 = vmov 5   ;;  %s13880_s12 = smov 112   ;;  %s15298_s1 = inlined_call_operand.vmem [shape: f32[8,9], index: 1, kind: input, shape index: {}]   ;;  %s15299_s0 = inlined_call_operand.vmem [shape: f32[8,256], index: 0, kind: input, shape index: {}]   ;;  %s15300_s2 = inlined_call_operand.vmem [shape: f32[4,1], index: 2, kind: input, shape index: {}]   ;;  %s15301_s3 = inlined_call_operand.vmem [shape: f32[4,1], index: 3, kind: input, shape index: {}]   ;;  %s15302_s4 = inlined_call_operand.vmem [shape: f32[8,36], index: 4, kind: input, shape index: {}]   ;;  %s15303_s7 = inlined_call_operand.vmem [shape: f32[1,546], index: 7, kind: input, shape index: {}]   ;;  %s15304_s5 = inlined_call_operand.vmem [shape: f32[8,1], index: 5, kind: input, shape index: {}]   ;;  %s15305_s6 = inlined_call_operand.vmem [shape: f32[8,1], index: 6, kind: input, shape index: {}]   ;;  %s15306_s8 = inlined_call_operand.vmem [shape: f32[16,256], index: 8, kind: output, shape index: {}]  }
   0x1   :  { %13855 = vset.pattern.permute.xlu1 %v13867_v0  ;;  %13853 = vset.pattern.permute.xlu0 %v13868_v1  ;;  %v75_v2 = vld [vmem:[%s15298_s1] sm:$0xff]  ;;  %v30_v5 = vld [vmem:[%s15299_s0 + $0x8] sm:$0xff]  ;;  %v13872_v7 = vmov 0.0   ;;  %v13873_v8 = vmov 4   ;;  %v13874_v9 = vmov 7   ;;  %v13875_v10 = vmov 6  }
   0x2   :  { %135 = vperm.xlu1 %13855, %v75_v2   ;;  %85 = vperm.xlu0 %13853, %v75_v2   ;;  %v29_v3 = vld [vmem:[%s15299_s0] sm:$0xff]  ;;  %v13876_v11 = vmov 0   ;;  %v13877_v12 = vmov 8   ;;  %v44_v13 = vlaneseq  ;;  %vm37_vm0 = vcmask 138240   ;;  %s13878_s0 = smov 127   ;;  %s13879_s1 = smov 126  }
   0x3   :  { %455 = vmatprep.mubr.f32.mxu1 %v13872_v7  ;;  %3484 = vmatprep.mubr.f32.mxu0 %v13872_v7  ;;  %s13881_s13 = smov 111   ;;  %s13882_s14 = smov 110   ;;  %vm100_vm7 = vcmask 1039360   ;;  %vm125_vm8 = vcmask 1031168   ;;  %vm150_vm9 = vcmask 916480   ;;  %vm175_vm10 = vcmask 908288  }
   0x4   :  { %v45_v14 = vand.u32 127, %v44_v13  ;;  %s13883_s15 = smov 96   ;;  %s13884_s16 = smov 95   ;;  %vm200_vm11 = vcmask 900096   ;;  %vm225_vm12 = vcmask 785408   ;;  %vm250_vm13 = vcmask 777216  }
   0x5   :  { %s13885_s17 = smov 94   ;;  %vm275_vm14 = vcmask 769024   ;;  %vm315_vm15 = vcmask 1043456   ;;  %s13887_s23 = smov 124  }
   0x6   :  { %13854 = vset.pattern.permute.xlu0 %v13869_v4  ;;  %33 = vrot.lane.b32.xlu1 %v29_v3, %s13870_s9  ;;  %v46_v15 = vadd.s32 128, %v45_v14  ;;  %v48_v17 = vand.u32 15, %v45_v14  ;;  %v47_v19 = vadd.s32 256, %v45_v14  ;;  %s13888_s24 = smov 120   ;;  %s13890_s25 = smov 108  }
   0x7   :  { %110 = vperm.xlu0 %13854, %v75_v2   ;;  %13857 = vset.pattern.permute.xlu1 %v13871_v6  ;;  %s13891_s26 = smov 104   ;;  %s13892_s27 = smov 100  }
   0x8   :  { %v49_v18 = vand.u32 15, %v46_v15  ;;  %vm63_vm1 = vcmp.ne.s32.totalorder %v48_v17, 1  ;;  %v50_v21 = vand.u32 15, %v47_v19  ;;  %vm51_vm3 = vcmp.ne.s32.totalorder %v48_v17, 0 }
   0x9   :  { %v13128_v25 = vsel %vm63_vm1, 1.0, %v13872_v7  ;;  %v13125_v35 = vsel %vm51_vm3, 1.0, %v13872_v7  ;;  %vm376_vm1 = vcmask 31744  }
   0xa   :  { %35 = vrot.lane.b32.xlu1 %v30_v5, %s13870_s9  ;;  %vm64_vm2 = vcmp.ne.s32.totalorder %v49_v18, 1  ;;  %vm65_vm4 = vcmp.ne.s32.totalorder %v50_v21, 1  ;;  %vm52_vm5 = vcmp.ne.s32.totalorder %v49_v18, 0  ;;  %vm53_vm6 = vcmp.ne.s32.totalorder %v50_v21, 0 }
   0xb   :  { %13856 = vset.pattern.permute.xlu0 %v13873_v8  ;;  %v13129_v26 = vsel %vm64_vm2, 1.0, %v13872_v7  ;;  %v13130_v36 = vsel %vm65_vm4, 1.0, %v13872_v7  ;;  %v13126_v41 = vsel %vm52_vm5, 1.0, %v13872_v7  ;;  %v13127_v42 = vsel %vm53_vm6, 1.0, %v13872_v7 }
   0xc   :  { %160 = vperm.xlu0 %13856, %v75_v2   ;;  %vm13893_vm2 = vmmov 0  }
   0xe   :  { %185 = vperm.xlu1 %13857, %v75_v2  }
  0x10   :  { %13859 = vset.pattern.permute.xlu0 %v13874_v9 }
  0x11   :  { %235 = vperm.xlu0 %13859, %v75_v2  }
  0x12   :  { %13858 = vset.pattern.permute.xlu1 %v13875_v10 }
  0x13   :  { %210 = vperm.xlu1 %13858, %v75_v2  }
  0x15   :  { %13862 = vset.pattern.permute.xlu0 %v13876_v11 }
  0x17   :  { %13860 = vset.pattern.permute.xlu1 %v13877_v12 }
  0x18   :  { %260 = vperm.xlu1 %13860, %v75_v2  }
  0x1c   :  { %13861 = vset.pattern.permute.xlu1 %v13876_v11 }
  0x1d   :  { %78 = vperm.xlu1 %13861, %v75_v2  }
  0x81   :  { %v136_v16 = vpop.permute.xlu1 %135  ;;  %v86_v22 = vpop.permute.xlu0 %85 }
  0x85   :  { %v34_v20 = vpop.permute.xlu1 %33 }
  0x86   :  { %v13952_v23 = vsel %vm37_vm0, 0.0, %v34_v20  ;;  %v111_v34 = vpop.permute.xlu0 %110 }
  0x87   :  { %v88_v24 = vmul.f32 %v86_v22, %v13952_v23  ;;  %v13961_v30 = vmul.f32 %v13128_v25, %v13952_v23  ;;  %v13969_v39 = vmul.f32 %v13125_v35, %v13952_v23 }
  0x89   :  { %94 = vrot.lane.b32.xlu0 %v88_v24, %s13878_s0  ;;  %v36_v27 = vpop.permute.xlu1 %35  ;;  %v113_v37 = vmul.f32 %v111_v34, %v13961_v30  ;;  %v138_v46 = vmul.f32 %v136_v16, %v13969_v39 }
  0x8a   :  { %v38_v28 = vsel %vm37_vm0, %v34_v20, %v36_v27  ;;  %v43_v29 = vsel %vm37_vm0, %v36_v27, 0.0  ;;  %vm352_vm0 = vcmask 277504  }
  0x8b   :  { %v90_v31 = vmul.f32 %v86_v22, %v43_v29  ;;  %v89_v32 = vmul.f32 %v86_v22, %v38_v28  ;;  %v73_v33 = vmul.f32 %v13129_v26, %v38_v28  ;;  %v74_v40 = vmul.f32 %v13130_v36, %v43_v29  ;;  %v161_v49 = vpop.permute.xlu0 %160 }
  0x8c   :  { %v13975_v43 = vmul.f32 %v13126_v41, %v38_v28  ;;  %v62_v44 = vmul.f32 %v13127_v42, %v43_v29  ;;  %v163_v50 = vmul.f32 %v161_v49, %v13952_v23  ;;  %v164_v51 = vmul.f32 %v161_v49, %v38_v28 }
  0x8d   :  { %98 = vrot.lane.b32.xlu0 %v90_v31, %s13878_s0  ;;  %96 = vrot.lane.b32.xlu1 %v89_v32, %s13878_s0  ;;  %v114_v38 = vmul.f32 %v111_v34, %v73_v33  ;;  %v115_v45 = vmul.f32 %v111_v34, %v74_v40  ;;  %v186_v52 = vpop.permute.xlu1 %185  ;;  %v165_v53 = vmul.f32 %v161_v49, %v43_v29 }
  0x8e   :  { %v140_v47 = vmul.f32 %v136_v16, %v62_v44  ;;  %v139_v48 = vmul.f32 %v136_v16, %v13975_v43  ;;  %v188_v54 = vmul.f32 %v186_v52, %v13961_v30  ;;  %v189_v55 = vmul.f32 %v186_v52, %v73_v33 }
  0x8f   :  { %v190_v56 = vmul.f32 %v186_v52, %v74_v40 }
  0x90   :  { %v236_v60 = vpop.permute.xlu0 %235 }
  0x91   :  { %119 = vrot.lane.b32.xlu1 %v113_v37, %s13879_s1  ;;  %121 = vrot.lane.b32.xlu0 %v114_v38, %s13879_s1  ;;  %v238_v61 = vmul.f32 %v236_v60, %v13952_v23  ;;  %v239_v63 = vmul.f32 %v236_v60, %v38_v28  ;;  %v240_v0 = vmul.f32 %v236_v60, %v43_v29 }
  0x92   :  { %v211_v57 = vpop.permute.xlu1 %210 }
  0x93   :  { %v213_v58 = vmul.f32 %v211_v57, %v13969_v39  ;;  %v214_v59 = vmul.f32 %v211_v57, %v13975_v43  ;;  %v215_v62 = vmul.f32 %v211_v57, %v62_v44 }
  0x95   :  { %123 = vrot.lane.b32.xlu1 %v115_v45, %s13879_s1  ;;  %144 = vrot.lane.b32.xlu0 %v138_v46, %s13880_s12 }
  0x97   :  { %v261_v1 = vpop.permute.xlu1 %260 }
  0x98   :  { %v263_v2 = vmul.f32 %v261_v1, %v13961_v30  ;;  %v264_v3 = vmul.f32 %v261_v1, %v73_v33  ;;  %v265_v4 = vmul.f32 %v261_v1, %v74_v40 }
  0x99   :  { %148 = vrot.lane.b32.xlu0 %v140_v47, %s13880_s12  ;;  %146 = vrot.lane.b32.xlu1 %v139_v48, %s13880_s12 }
  0x9c   :  { %v79_v5 = vpop.permute.xlu1 %78 }
  0x9d   :  { %171 = vrot.lane.b32.xlu0 %v164_v51, %s13881_s13  ;;  %169 = vrot.lane.b32.xlu1 %v163_v50, %s13881_s13  ;;  %v83_v8 = vmul.f32 %v79_v5, %v62_v44  ;;  %v81_v30 = vmul.f32 %v79_v5, %v13969_v39  ;;  %v82_v35 = vmul.f32 %v79_v5, %v13975_v43 }
  0xa1   :  { %173 = vrot.lane.b32.xlu1 %v165_v53, %s13881_s13  ;;  %194 = vrot.lane.b32.xlu0 %v188_v54, %s13882_s14 }
  0xa5   :  { %196 = vrot.lane.b32.xlu1 %v189_v55, %s13882_s14  ;;  %198 = vrot.lane.b32.xlu0 %v190_v56, %s13882_s14 }
  0xa9   :  { %221 = vrot.lane.b32.xlu0 %v214_v59, %s13883_s15  ;;  %219 = vrot.lane.b32.xlu1 %v213_v58, %s13883_s15 }
  0xad   :  { %244 = vrot.lane.b32.xlu0 %v238_v61, %s13884_s16  ;;  %223 = vrot.lane.b32.xlu1 %v215_v62, %s13883_s15 }
  0xb1   :  { %248 = vrot.lane.b32.xlu0 %v240_v0, %s13884_s16  ;;  %246 = vrot.lane.b32.xlu1 %v239_v63, %s13884_s16 }
  0xb5   :  { %271 = vrot.lane.b32.xlu0 %v264_v3, %s13885_s17  ;;  %269 = vrot.lane.b32.xlu1 %v263_v2, %s13885_s17 }
  0xb9   :  { %273 = vrot.lane.b32.xlu1 %v265_v4, %s13885_s17 }
  0xfb   :  { %v95_v6 = vpop.permute.xlu0 %94 }
  0xff   :  { %v99_v9 = vpop.permute.xlu0 %98  ;;  %v97_v10 = vpop.permute.xlu1 %96 }
 0x100   :  { %v108_v11 = vadd.f32 %v99_v9, %v83_v8  ;;  %v101_v29 = vsel %vm100_vm7, %v95_v6, %v97_v10  ;;  %v102_v33 = vsel %vm100_vm7, %v97_v10, %v99_v9 }
 0x101   :  { %v106_v36 = vadd.f32 %v101_v29, %v81_v30  ;;  %v107_v40 = vadd.f32 %v102_v33, %v82_v35 }
 0x103   :  { %v122_v12 = vpop.permute.xlu0 %121  ;;  %v120_v14 = vpop.permute.xlu1 %119 }
 0x104   :  { %v126_v34 = vsel %vm125_vm8, %v120_v14, %v122_v12 }
 0x105   :  { %v131_v41 = vadd.f32 %v126_v34, %v106_v36 }
 0x107   :  { %v145_v15 = vpop.permute.xlu0 %144  ;;  %v124_v16 = vpop.permute.xlu1 %123 }
 0x108   :  { %v133_v17 = vadd.f32 %v124_v16, %v108_v11  ;;  %v127_v37 = vsel %vm125_vm8, %v122_v12, %v124_v16 }
 0x109   :  { %v132_v47 = vadd.f32 %v127_v37, %v107_v40 }
 0x10b   :  { %v149_v18 = vpop.permute.xlu0 %148  ;;  %v147_v19 = vpop.permute.xlu1 %146 }
 0x10c   :  { %v158_v20 = vadd.f32 %v149_v18, %v133_v17  ;;  %v151_v38 = vsel %vm150_vm9, %v145_v15, %v147_v19  ;;  %v152_v44 = vsel %vm150_vm9, %v147_v19, %v149_v18 }
 0x10d   :  { %v156_v48 = vadd.f32 %v151_v38, %v131_v41  ;;  %v157_v50 = vadd.f32 %v152_v44, %v132_v47 }
 0x10f   :  { %v172_v21 = vpop.permute.xlu0 %171  ;;  %v170_v22 = vpop.permute.xlu1 %169 }
 0x110   :  { %v176_v45 = vsel %vm175_vm10, %v170_v22, %v172_v21 }
 0x111   :  { %v181_v51 = vadd.f32 %v176_v45, %v156_v48 }
 0x113   :  { %v195_v23 = vpop.permute.xlu0 %194  ;;  %v174_v24 = vpop.permute.xlu1 %173 }
 0x114   :  { %v183_v25 = vadd.f32 %v174_v24, %v158_v20  ;;  %v177_v43 = vsel %vm175_vm10, %v172_v21, %v174_v24 }
 0x115   :  { %v182_v57 = vadd.f32 %v177_v43, %v157_v50 }
 0x117   :  { %v199_v26 = vpop.permute.xlu0 %198  ;;  %v197_v27 = vpop.permute.xlu1 %196 }
 0x118   :  { %v208_v28 = vadd.f32 %v199_v26, %v183_v25  ;;  %v201_v49 = vsel %vm200_vm11, %v195_v23, %v197_v27  ;;  %v202_v54 = vsel %vm200_vm11, %v197_v27, %v199_v26 }
 0x119   :  { %v206_v58 = vadd.f32 %v201_v49, %v181_v51  ;;  %v207_v61 = vadd.f32 %v202_v54, %v182_v57 }
 0x11b   :  { %v222_v31 = vpop.permute.xlu0 %221  ;;  %v220_v32 = vpop.permute.xlu1 %219 }
 0x11c   :  { %v226_v55 = vsel %vm225_vm12, %v220_v32, %v222_v31 }
 0x11d   :  { %v231_v62 = vadd.f32 %v226_v55, %v206_v58 }
 0x11f   :  { %v245_v42 = vpop.permute.xlu0 %244  ;;  %v224_v39 = vpop.permute.xlu1 %223 }
 0x120   :  { %v233_v46 = vadd.f32 %v224_v39, %v208_v28  ;;  %v227_v59 = vsel %vm225_vm12, %v222_v31, %v224_v39  ;;  %v305_v28 = vld [vmem:[%s15300_s2] sm:$0xf]  ;;  %s13886_s2 = smov 34  }
 0x121   :  { %v232_v3 = vadd.f32 %v227_v59, %v207_v61  ;;  %v309_v31 = vld [vmem:[%s15301_s3] sm:$0xf] }
 0x123   :  { %v249_v52 = vpop.permute.xlu0 %248  ;;  %v247_v53 = vpop.permute.xlu1 %246 }
 0x124   :  { %v258_v56 = vadd.f32 %v249_v52, %v233_v46  ;;  %v251_v60 = vsel %vm250_vm13, %v245_v42, %v247_v53  ;;  %v252_v1 = vsel %vm250_vm13, %v247_v53, %v249_v52  ;;  %v14045_v53 = vld [vmem:[%s15302_s4] sm:$0xff]  ;;  %s13889_s4 = smov 116  }
 0x125   :  { %v256_v4 = vadd.f32 %v251_v60, %v231_v62  ;;  %v257_v5 = vadd.f32 %v252_v1, %v232_v3 }
 0x127   :  { %v272_v63 = vpop.permute.xlu0 %271  ;;  %v270_v0 = vpop.permute.xlu1 %269 }
 0x128   :  { %v276_v2 = vsel %vm275_vm14, %v270_v0, %v272_v63 }
 0x129   :  { %v281_v6 = vadd.f32 %v276_v2, %v256_v4 }
 0x12b   :  { %v274_v8 = vpop.permute.xlu1 %273  ;;  %v287_v12 = vmul.f32 %v281_v6, %v281_v6 }
 0x12c   :  { %v277_v9 = vsel %vm275_vm14, %v272_v63, %v274_v8  ;;  %v283_v39 = vadd.f32 %v274_v8, %v258_v56 }
 0x12d   :  { %v282_v10 = vadd.f32 %v277_v9, %v257_v5 }
 0x12f   :  { %v284_v11 = vadd.f32 %v282_v10, %v281_v6  ;;  %v288_v14 = vmul.f32 %v282_v10, %v282_v10 }
 0x131   :  { %285 = vadd.xlane.f32.xlu0 %v284_v11  ;;  %v289_v15 = vadd.f32 %v288_v14, %v287_v12 }
 0x133   :  { %290 = vadd.xlane.f32.xlu1 %v289_v15 }
 0x1be   :  { %v286_v16 = vpop.xlane.xlu0 %285 }
 0x1bf   :  { %v293_v17 = vrot.slane %v286_v16, 4 }
 0x1c0   :  { %v291_v18 = vpop.xlane.xlu1 %290 }
 0x1c1   :  { %v295_v19 = vadd.f32 %v293_v17, %v286_v16  ;;  %v297_v20 = vrot.slane %v291_v18, 4 }
 0x1c3   :  { %v300_v21 = vmul.f32 0.001953125, %v295_v19  ;;  %v299_v22 = vadd.f32 %v297_v20, %v291_v18 }
 0x1c5   :  { %v302_v23 = vmul.f32 %v300_v21, %v300_v21  ;;  %v301_v24 = vmul.f32 0.001953125, %v299_v22 }
 0x1c7   :  { %v303_v25 = vsub.f32 %v301_v24, %v302_v23 }
 0x1c9   :  { %v304_v26 = vmax.f32 %v303_v25, 0.0 }
 0x1cb   :  { %v306_v27 = vadd.f32 1e-05, %v304_v26 }
 0x1cd   :  { %13863 = vrsqrt.f32 %v306_v27 }
 0x1d7   :  { %v13864_v29 = vpop.eup %13863 }
 0x1d8   :  { %v308_v30 = vmul.f32 %v13864_v29, %v305_v28 }
 0x1da   :  { %v313_v32 = vrot.slane %v308_v30, 4  ;;  %v310_v33 = vmul.f32 %v308_v30, %v300_v21 }
 0x1dc   :  { %v316_v34 = vsel %vm315_vm15, %v308_v30, %v313_v32  ;;  %v311_v35 = vsub.f32 %v309_v31, %v310_v33 }
 0x1dd   :  { %323 = vperm.xlu0 %13862, %v316_v34  }
 0x1de   :  { %v318_v36 = vrot.slane %v311_v35, 4 }
 0x1e0   :  { %v320_v37 = vsel %vm315_vm15, %v311_v35, %v318_v36 }
 0x1e1   :  { %331 = vperm.xlu1 %13861, %v320_v37  }
 0x25c   :  { %v324_v38 = vpop.permute.xlu0 %323 }
 0x25d   :  { %v326_v40 = vmul.f32 %v324_v38, %v281_v6  ;;  %v327_v41 = vmul.f32 %v324_v38, %v282_v10  ;;  %v328_v46 = vmul.f32 %v324_v38, %v283_v39 }
 0x260   :  { %v332_v42 = vpop.permute.xlu1 %331 }
 0x261   :  { %v334_v44 = vadd.f32 %v332_v42, %v326_v40  ;;  %v335_v45 = vadd.f32 %v332_v42, %v327_v41  ;;  %v336_v48 = vadd.f32 %v332_v42, %v328_v46 }
 0x263   :  { %v14030_v47 = vmax.f32 %v334_v44, 0.0  ;;  %v14032_v43 = vmax.f32 %v335_v45, 0.0  ;;  %v339_v50 = vmax.f32 %v336_v48, 0.0 }
 0x265   :  { %362 = vrot.lane.b32.xlu0 %v14030_v47, %s13878_s0  ;;  %v343_v49 = vrot.slane %v14030_v47, 4  ;;  %v344_v51 = vrot.slane %v14032_v43, 4  ;;  %v345_v52 = vrot.slane %v339_v50, 4 }
 0x267   :  { %346 = vrot.lane.b32.xlu1 %v343_v49, %s13886_s2 }
 0x269   :  { %3157 = vrot.lane.b32.xlu0 %v14032_v43, %s13879_s1 }
 0x26b   :  { %348 = vrot.lane.b32.xlu1 %v344_v51, %s13886_s2 }
 0x26d   :  { %3155 = vrot.lane.b32.xlu0 %v14030_v47, %s13879_s1 }
 0x26f   :  { %350 = vrot.lane.b32.xlu1 %v345_v52, %s13886_s2 }
 0x273   :  { %359 = vrot.lane.b32.xlu1 %v14045_v53, %s13887_s23 }
 0x277   :  { %364 = vrot.lane.b32.xlu1 %v14032_v43, %s13878_s0 }
 0x2d7   :  { %v363_v62 = vpop.permute.xlu0 %362 }
 0x2d9   :  { %v347_v54 = vpop.permute.xlu1 %346 }
 0x2da   :  { %v14051_v55 = vsel %vm352_vm0, %v339_v50, %v347_v54 }
 0x2db   :  { %366 = vrot.lane.b32.xlu1 %v14051_v55, %s13878_s0  ;;  %v3158_v2 = vpop.permute.xlu0 %3157 }
 0x2dd   :  { %v349_v56 = vpop.permute.xlu1 %348 }
 0x2de   :  { %v14064_v59 = vsel %vm352_vm0, %v347_v54, %v349_v56 }
 0x2df   :  { %3153 = vrot.lane.b32.xlu1 %v14045_v53, %s13888_s24  ;;  %v3156_v8 = vpop.permute.xlu0 %3155 }
 0x2e0   :  { %v3165_v14 = vsel %vm125_vm8, %v3156_v8, %v3158_v2 }
 0x2e1   :  { %v351_v57 = vpop.permute.xlu1 %350  ;;  %v3171_v19 = vsel %vm315_vm15, %v3165_v14, 0 }
 0x2e2   :  { %v14057_v58 = vsel %vm352_vm0, %v349_v56, %v351_v57  ;;  %v14177_v25 = vand.u32 4294901760, %v3171_v19 }
 0x2e3   :  { %3159 = vrot.lane.b32.xlu1 %v14051_v55, %s13879_s1  ;;  %370 = vrot.lane.b32.xlu0 %v14057_v58, %s13878_s0 }
 0x2e4   :  { %v14194_v34 = vsub.f32 %v3171_v19, %v14177_v25 }
 0x2e5   :  { %v360_v60 = vpop.permute.xlu1 %359 }
 0x2e6   :  { %v377_v61 = vsel %vm376_vm1, %v360_v60, 0  ;;  %v3267_v42 = vand.u32 4294901760, %v14194_v34 }
 0x2e7   :  { %368 = vrot.lane.b32.xlu1 %v14064_v59, %s13878_s0  ;;  %4562 = vrot.lane.b32.xlu0 %v14045_v53, %s13889_s4  ;;  %v14141_v0 = vand.u32 4294901760, %v377_v61 }
 0x2e9   :  { %v365_v63 = vpop.permute.xlu1 %364  ;;  %v14145_v3 = vsub.f32 %v377_v61, %v14141_v0 }
 0x2ea   :  { %v372_v1 = vsel %vm100_vm7, %v363_v62, %v365_v63 }
 0x2eb   :  { %3163 = vrot.lane.b32.xlu1 %v14057_v58, %s13879_s1  ;;  %4568 = vrot.lane.b32.xlu0 %v14051_v55, %s13880_s12  ;;  %v379_v4 = vsel %vm315_vm15, %v372_v1, 0  ;;  %v14151_v6 = vand.u32 4294901760, %v14145_v3 }
 0x2ec   :  { %v14148_v5 = vand.u32 4294901760, %v379_v4 }
 0x2ed   :  { %v459_v12 = vsub.f32 %v14145_v3, %v14151_v6 }
 0x2ee   :  { %v14154_v9 = vsub.f32 %v379_v4, %v14148_v5 }
 0x2ef   :  { %4566 = vrot.lane.b32.xlu1 %v14032_v43, %s13880_s12  ;;  %4572 = vrot.lane.b32.xlu0 %v14057_v58, %s13880_s12  ;;  %v14171_v22 = vand.u32 4294901760, %v459_v12 }
 0x2f0   :  { %v475_v17 = vand.u32 4294901760, %v14154_v9 }
 0x2f2   :  { %v476_v28 = vsub.f32 %v14154_v9, %v475_v17 }
 0x2f3   :  { %4564 = vrot.lane.b32.xlu1 %v14030_v47, %s13880_s12  ;;  %5975 = vrot.lane.b32.xlu0 %v14032_v43, %s13881_s13 }
 0x2f4   :  { %v477_v36 = vand.u32 4294901760, %v476_v28 }
 0x2f7   :  { %5971 = vrot.lane.b32.xlu1 %v14045_v53, %s13880_s12  ;;  %5973 = vrot.lane.b32.xlu0 %v14030_v47, %s13881_s13 }
 0x2fb   :  { %5977 = vrot.lane.b32.xlu1 %v14051_v55, %s13881_s13  ;;  %7380 = vrot.lane.b32.xlu0 %v14045_v53, %s13890_s25 }
 0x2ff   :  { %5981 = vrot.lane.b32.xlu1 %v14057_v58, %s13881_s13  ;;  %7386 = vrot.lane.b32.xlu0 %v14051_v55, %s13882_s14 }
 0x303   :  { %7384 = vrot.lane.b32.xlu1 %v14032_v43, %s13882_s14  ;;  %3161 = vrot.lane.b32.xlu0 %v14064_v59, %s13879_s1 }
 0x307   :  { %7382 = vrot.lane.b32.xlu1 %v14030_v47, %s13882_s14  ;;  %4570 = vrot.lane.b32.xlu0 %v14064_v59, %s13880_s12 }
 0x30b   :  { %7390 = vrot.lane.b32.xlu1 %v14057_v58, %s13882_s14  ;;  %8793 = vrot.lane.b32.xlu0 %v14032_v43, %s13883_s15 }
 0x30f   :  { %8789 = vrot.lane.b32.xlu1 %v14045_v53, %s13891_s26  ;;  %8791 = vrot.lane.b32.xlu0 %v14030_v47, %s13883_s15 }
 0x313   :  { %8795 = vrot.lane.b32.xlu1 %v14051_v55, %s13883_s15  ;;  %8799 = vrot.lane.b32.xlu0 %v14057_v58, %s13883_s15 }
 0x317   :  { %5979 = vrot.lane.b32.xlu1 %v14064_v59, %s13881_s13  ;;  %10198 = vrot.lane.b32.xlu0 %v14045_v53, %s13892_s27 }
 0x31b   :  { %7388 = vrot.lane.b32.xlu1 %v14064_v59, %s13882_s14  ;;  %10204 = vrot.lane.b32.xlu0 %v14051_v55, %s13884_s16 }
 0x31f   :  { %10202 = vrot.lane.b32.xlu1 %v14032_v43, %s13884_s16  ;;  %8797 = vrot.lane.b32.xlu0 %v14064_v59, %s13883_s15 }
 0x323   :  { %10200 = vrot.lane.b32.xlu1 %v14030_v47, %s13884_s16  ;;  %10206 = vrot.lane.b32.xlu0 %v14064_v59, %s13884_s16 }
 0x327   :  { %10208 = vrot.lane.b32.xlu1 %v14057_v58, %s13884_s16  ;;  %11611 = vrot.lane.b32.xlu0 %v14032_v43, %s13885_s17 }
 0x32b   :  { %11607 = vrot.lane.b32.xlu1 %v14045_v53, %s13883_s15  ;;  %11609 = vrot.lane.b32.xlu0 %v14030_v47, %s13885_s17 }
 0x32f   :  { %11613 = vrot.lane.b32.xlu1 %v14051_v55, %s13885_s17  ;;  %11617 = vrot.lane.b32.xlu0 %v14057_v58, %s13885_s17 }
 0x333   :  { %11615 = vrot.lane.b32.xlu1 %v14064_v59, %s13885_s17 }
 0x34d   :  { %v14156_v10 = vpop.permute.xlu1 %366 }
 0x34e   :  { %v373_v11 = vsel %vm100_vm7, %v365_v63, %v14156_v10 }
 0x34f   :  { %v381_v15 = vsel %vm315_vm15, %v373_v11, 0 }
 0x350   :  { %v14164_v16 = vand.u32 4294901760, %v381_v15 }
 0x351   :  { %v3154_v18 = vpop.permute.xlu1 %3153 }
 0x352   :  { %v468_v20 = vsub.f32 %v381_v15, %v14164_v16  ;;  %v3169_v21 = vsel %vm376_vm1, %v3154_v18, 0  ;;  %390 = vmatprep.subr.mxu1 %v14164_v16 }
 0x353   :  { %v14173_v23 = vand.u32 4294901760, %v3169_v21  ;;  %392 = vmatpush1.msra.mxu1 %v14148_v5 }
 0x354   :  { %461 = vmatmul.mubr.f32.vlgmr.msra.gmra.mrb[0].mxu1 %v14171_v22  ;;  %v469_v24 = vand.u32 4294901760, %v468_v20 }
 0x355   :  { %v14180_v26 = vsub.f32 %v3169_v21, %v14173_v23  ;;  %v14182_v27 = vpop.permute.xlu1 %3159  ;;  %541 = vmatprep.mubr.f32.mxu1 %v13872_v7  ;;  %v14227_v46 = vpop.permute.xlu0 %370 }
 0x356   :  { %v3166_v29 = vsel %vm125_vm8, %v3158_v2, %v14182_v27  ;;  %v470_v30 = vsub.f32 %v468_v20, %v469_v24 }
 0x357   :  { %v3173_v31 = vsel %vm315_vm15, %v3166_v29, 0  ;;  %v14197_v37 = vand.u32 4294901760, %v14180_v26 }
 0x358   :  { %v14191_v32 = vand.u32 4294901760, %v3173_v31  ;;  %v471_v33 = vand.u32 4294901760, %v470_v30 }
 0x359   :  { %v369_v35 = vpop.permute.xlu1 %368  ;;  %v3251_v52 = vsub.f32 %v14180_v26, %v14197_v37 }
 0x35a   :  { %v14200_v38 = vsub.f32 %v3173_v31, %v14191_v32  ;;  %472 = vmatprep.subr.mxu1 %v471_v33  ;;  %3419 = vmatprep.subr.mxu0 %v14191_v32  ;;  %v375_v48 = vsel %vm100_vm7, %v369_v35, %v14227_v46  ;;  %v374_v50 = vsel %vm100_vm7, %v14156_v10, %v369_v35 }
 0x35b   :  { %478 = vmatpush1.msra.mxu1 %v477_v36  ;;  %3421 = vmatpush1.msra.mxu0 %v14177_v25  ;;  %v385_v51 = vsel %vm315_vm15, %v375_v48, 0  ;;  %v383_v54 = vsel %vm315_vm15, %v374_v50, 0  ;;  %v14260_v61 = vand.u32 4294901760, %v3251_v52  ;;  %v387_v48 = vsel %vm315_vm15, %v14227_v46, 0 }
 0x35c   :  { %543 = vmatmul.mubr.f32.vlgmr.msra.gmra.mrb[0].mxu1 %v14141_v0  ;;  %551 = vmatprep.subr.mxu1 %v468_v20  ;;  %v3261_v40 = vand.u32 4294901760, %v14200_v38  ;;  %v14244_v56 = vand.u32 4294901760, %v385_v51  ;;  %v14255_v60 = vand.u32 4294901760, %v383_v54 }
 0x35d   :  { %3488 = vmatmul.mubr.f32.vlgmr.msra.gmra.mrb[0].mxu0 %v14197_v37  ;;  %554 = vmatpush1.msra.mxu1 %v14154_v9  ;;  %v14208_v41 = vpop.permute.xlu1 %3163 }
 0x35e   :  { %v3179_v39 = vsel %vm315_vm15, %v14208_v41, 0  ;;  %627 = vmatprep.subr.mxu1 %v14164_v16  ;;  %3497 = vmatprep.subr.mxu0 %v3261_v40  ;;  %v14263_v62 = vsub.f32 %v385_v51, %v14244_v56  ;;  %v14270_v1 = vsub.f32 %v383_v54, %v14255_v60  ;;  %v14347_v51 = vand.u32 4294901760, %v387_v48 }
 0x35f   :  { %3501 = vmatpush1.msra.mxu0 %v3267_v42  ;;  %617 = vmatprep.mubr.f32.mxu1 %v13872_v7  ;;  %v14219_v44 = vand.u32 4294901760, %v3179_v39 }
 0x360   :  { %3573 = vmatprep.subr.mxu0 %v14191_v32  ;;  %3564 = vmatprep.mubr.f32.mxu0 %v13872_v7  ;;  %v934_v2 = vand.u32 4294901760, %v14263_v62  ;;  %v940_v4 = vand.u32 4294901760, %v14270_v1  ;;  %v1397_v46 = vsub.f32 %v387_v48, %v14347_v51 }
 0x361   :  { %v14224_v45 = vsub.f32 %v3179_v39, %v14219_v44  ;;  %v4567_v11 = vpop.permute.xlu1 %4566 }
 0x362   :  { %v935_v8 = vsub.f32 %v14263_v62, %v934_v2  ;;  %v941_v9 = vsub.f32 %v14270_v1, %v940_v4  ;;  %v1398_v54 = vand.u32 4294901760, %v1397_v46 }
 0x363   :  { %v4190_v49 = vand.u32 4294901760, %v14224_v45 }
 0x364   :  { %620 = vmatmul.mubr.f32.vlgmr.msra.gmra.mrb[0].mxu1 %v14145_v3  ;;  %v936_v10 = vand.u32 4294901760, %v935_v8  ;;  %v942_v12 = vand.u32 4294901760, %v941_v9  ;;  %v1767_v9 = vsel %vm315_vm15, %v14030_v47, 0 }
 0x365   :  { %629 = vmatpush1.msra.mxu1 %v14148_v5  ;;  %3566 = vmatmul.mubr.f32.vlgmr.msra.gmra.mrb[0].mxu0 %v14173_v23  ;;  %v4191_v57 = vsub.f32 %v14224_v45, %v4190_v49 }
 0x366   :  { %3575 = vmatpush1.msra.mxu0 %v14177_v25  ;;  %705 = vmatprep.subr.mxu1 %v469_v24 }
 0x367   :  { %692 = vmatprep.mubr.f32.mxu1 %v13872_v7  ;;  %3638 = vmatprep.mubr.f32.mxu0 %v13872_v7  ;;  %v4192_v63 = vand.u32 4294901760, %v4191_v57 }
 0x368   :  { %13299 = vmatprep.subr.mxu0 %v13872_v7 }
 0x36c   :  { %696 = vmatmul.mubr.f32.vlgmr.msra.gmra.mrb[0].mxu1 %v14151_v6 }
 0x36d   :  { %709 = vmatpush1.msra.mxu1 %v475_v17  ;;  %3640 = vmatmul.mubr.f32.vlgmr.msra.gmra.mrb[0].mxu0 %v14173_v23 }
 0x36e   :  { %13300 = vmatpush3.msra.mxu0 %v14219_v44  ;;  %781 = vmatprep.subr.mxu1 %v14164_v16  ;;  %v4565_v16 = vpop.permute.xlu1 %4564 }
 0x36f   :  { %13301 = vmatprep.mubr.msk.f32.mxu0 %vm13893_vm2, %v13872_v7  ;;  %13304 = vmatprep.subr.mxu0 %v13872_v7  ;;  %v4574_v19 = vsel %vm150_vm9, %v4565_v16, %v4567_v11 }
 0x370   :  { %772 = vmatprep.mubr.f32.mxu1 %v13872_v7  ;;  %v4580_v24 = vsel %vm315_vm15, %v4574_v19, 0 }
 0x371   :  { %13302 = vmatmul.mubr.f32.vlgmr.msra.gmra.mrb[2].mxu0 %v14260_v61  ;;  %v14318_v28 = vand.u32 4294901760, %v4580_v24 }
 0x372   :  { %13305 = vmatpush3.msra.mxu0 %v4192_v63  ;;  %13306 = vmatprep.mubr.msk.f32.mxu0 %vm13893_vm2, %v13872_v7 }
 0x373   :  { %13309 = vmatprep.subr.mxu0 %v13872_v7  ;;  %v4675_v31 = vsub.f32 %v4580_v24, %v14318_v28 }
 0x374   :  { %774 = vmatmul.mubr.f32.vlgmr.msra.gmra.mrb[0].mxu1 %v14141_v0 }
 0x375   :  { %783 = vmatpush1.msra.mxu1 %v14148_v5  ;;  %846 = vmatprep.mubr.f32.mxu1 %v13872_v7  ;;  %v4563_v5 = vpop.permute.xlu0 %4562  ;;  %v4676_v36 = vand.u32 4294901760, %v4675_v31 }
 0x376   :  { %855 = vmatprep.subr.mxu1 %v14244_v56  ;;  %v4578_v17 = vsel %vm376_vm1, %v4563_v5, 0 }
 0x377   :  { %v14305_v20 = vand.u32 4294901760, %v4578_v17 }
 0x379   :  { %13307 = vmatmul.mubr.f32.vlgmr.msra.gmra.mrb[2].mxu0 %v14173_v23  ;;  %v14291_v14 = vpop.permute.xlu0 %4568  ;;  %v14322_v29 = vsub.f32 %v4578_v17, %v14305_v20 }
 0x37a   :  { %13310 = vmatpush3.msra.mxu0 %v14224_v45  ;;  %13311 = vmatprep.mubr.msk.f32.mxu0 %vm13893_vm2, %v13872_v7  ;;  %v4575_v15 = vsel %vm150_vm9, %v4567_v11, %v14291_v14 }
 0x37b   :  { %13314 = vmatprep.subr.mxu0 %v13872_v7  ;;  %v4582_v18 = vsel %vm315_vm15, %v4575_v15, 0  ;;  %v14328_v33 = vand.u32 4294901760, %v14322_v29 }
 0x37c   :  { %848 = vmatmul.mubr.f32.vlgmr.msra.gmra.mrb[0].mxu1 %v14141_v0  ;;  %v14307_v21 = vand.u32 4294901760, %v4582_v18 }
 0x37d   :  { %857 = vmatpush1.msra.mxu1 %v14255_v60  ;;  %920 = vmatprep.mubr.f32.mxu1 %v13872_v7  ;;  %v4660_v45 = vsub.f32 %v14322_v29, %v14328_v33 }
 0x37e   :  { %937 = vmatprep.subr.mxu1 %v936_v10  ;;  %v4669_v30 = vsub.f32 %v4582_v18, %v14307_v21  ;;  %v5972_v18 = vpop.permute.xlu1 %5971 }
 0x37f   :  { %v14343_v50 = vand.u32 4294901760, %v4660_v45 }
 0x380   :  { %926 = vmatmul.mubr.f32.vlgmr.msra.gmra.mrb[2].mxu1 %v14171_v22  ;;  %v4670_v35 = vand.u32 4294901760, %v4669_v30 }
 0x381   :  { %943 = vmatpush1.msra.mxu1 %v942_v12  ;;  %13312 = vmatmul.mubr.f32.vlgmr.msra.gmra.mrb[2].mxu0 %v14180_v26 }
 0x382   :  { %13315 = vmatpush3.msra.mxu0 %v14219_v44  ;;  %1016 = vmatprep.subr.mxu1 %v14263_v62  ;;  %v4671_v39 = vsub.f32 %v4669_v30, %v4670_v35 }
 0x383   :  { %1006 = vmatprep.mubr.f32.mxu1 %v13872_v7  ;;  %13316 = vmatprep.mubr.msk.f32.mxu0 %vm13893_vm2, %v13872_v7 }
 0x384   :  { %13319 = vmatprep.subr.mxu0 %v13872_v7 }
 0x388   :  { %1008 = vmatmul.mubr.f32.vlgmr.msra.gmra.mrb[2].mxu1 %v14141_v0 }
 0x389   :  { %1019 = vmatpush1.msra.mxu1 %v14270_v1  ;;  %13317 = vmatmul.mubr.f32.vlgmr.msra.gmra.mrb[2].mxu0 %v14197_v37 }
 0x38a   :  { %13320 = vmatpush3.msra.mxu0 %v4190_v49  ;;  %1092 = vmatprep.subr.mxu1 %v14244_v56  ;;  %v4677_v49 = vsub.f32 %v4675_v31, %v4676_v36 }
 0x38b   :  { %1082 = vmatprep.mubr.f32.mxu1 %v13872_v7  ;;  %13321 = vmatprep.mubr.msk.f32.mxu0 %vm13893_vm2, %v13872_v7 }
 0x38c   :  { %13324 = vmatprep.subr.mxu0 %v13872_v7  ;;  %v4678_v52 = vand.u32 4294901760, %v4677_v49 }
 0x390   :  { %1085 = vmatmul.mubr.f32.vlgmr.msra.gmra.mrb[2].mxu1 %v14145_v3 }
 0x391   :  { %1094 = vmatpush1.msra.mxu1 %v14255_v60  ;;  %13322 = vmatmul.mubr.f32.vlgmr.msra.gmra.mrb[2].mxu0 %v14173_v23 }
 0x392   :  { %13325 = vmatpush3.msra.mxu0 %v14219_v44  ;;  %1170 = vmatprep.subr.mxu1 %v934_v2  ;;  %v4672_v44 = vand.u32 4294901760, %v4671_v39  ;;  %v1765_v2 = vsel %vm376_vm1, %v14045_v53, 0  ;;  %v5987_v39 = vsel %vm376_vm1, %v5972_v18, 0 }
 0x393   :  { %4591 = vmatprep.subr.mxu0 %v14307_v21  ;;  %1157 = vmatprep.mubr.f32.mxu1 %v13872_v7  ;;  %v14411_v5 = vand.u32 4294901760, %v1765_v2  ;;  %v14479_v49 = vand.u32 4294901760, %v5987_v39 }
 0x394   :  { %13326 = vmatprep.mubr.msk.f32.mxu0 %vm13893_vm2, %v13872_v7 }
 0x398   :  { %1161 = vmatmul.mubr.f32.vlgmr.msra.gmra.mrb[2].mxu1 %v14151_v6 }
 0x399   :  { %1174 = vmatpush1.msra.mxu1 %v940_v4  ;;  %13327 = vmatmul.mubr.f32.vlgmr.msra.gmra.mrb[2].mxu0 %v14173_v23 }
 0x39a   :  { %4593 = vmatpush1.msra.mxu0 %v14318_v28  ;;  %1246 = vmatprep.subr.mxu1 %v14244_v56  ;;  %v1399_v56 = vsub.f32 %v1397_v46, %v1398_v54 }
 0x39b   :  { %4673 = vmatprep.subr.mxu0 %v4672_v44  ;;  %4656 = vmatprep.mubr.f32.mxu0 %v13872_v7 }
 0x39c   :  { %1237 = vmatprep.mubr.f32.mxu1 %v13872_v7  ;;  %v1400_v57 = vand.u32 4294901760, %v1399_v56 }
 0x39d   :  { %4662 = vmatmul.mubr.f32.vlgmr.msra.gmra.mrb[0].mxu0 %v14343_v50 }
 0x39e   :  { %4679 = vmatpush1.msra.mxu0 %v4678_v52  ;;  %4742 = vmatprep.mubr.f32.mxu0 %v13872_v7  ;;  %v14495_v52 = vsub.f32 %v5987_v39, %v14479_v49 }
 0x39f   :  { %4752 = vmatprep.subr.mxu0 %v4669_v30 }
 0x3a0   :  { %1239 = vmatmul.mubr.f32.vlgmr.msra.gmra.mrb[2].mxu1 %v14141_v0  ;;  %v14503_v56 = vand.u32 4294901760, %v14495_v52 }
 0x3a1   :  { %1248 = vmatpush1.msra.mxu1 %v14255_v60  ;;  %1311 = vmatprep.mubr.f32.mxu1 %v13872_v7  ;;  %v14373_v60 = vpop.permute.xlu0 %4572 }
 0x3a2   :  { %13239 = vmatprep.subr.mxu1 %v13872_v7 }
 0x3a5   :  { %4744 = vmatmul.mubr.f32.vlgmr.msra.gmra.mrb[0].mxu0 %v14305_v20 }
 0x3a6   :  { %4755 = vmatpush1.msra.mxu0 %v4675_v31  ;;  %4818 = vmatprep.mubr.f32.mxu0 %v13872_v7  ;;  %v14462_v31 = vpop.permute.xlu1 %5977 }
 0x3a7   :  { %4828 = vmatprep.subr.mxu0 %v14307_v21 }
 0x3a8   :  { %1313 = vmatmul.mubr.f32.vlgmr.msra.gmra.mrb[2].mxu1 %v14141_v0 }
 0x3a9   :  { %13240 = vmatpush3.msra.mxu1 %v14347_v51  ;;  %13241 = vmatprep.mubr.msk.f32.mxu1 %vm13893_vm2, %v13872_v7 }
 0x3aa   :  { %13244 = vmatprep.subr.mxu1 %v13872_v7  ;;  %v14554_v18 = vpop.permute.xlu1 %5981 }
 0x3ac   :  { %13242 = vmatmul.mubr.f32.vlgmr.msra.gmra.mrb[4].mxu1 %v14171_v22  ;;  %v4588_v22 = vsel %vm315_vm15, %v14373_v60, 0 }
 0x3ad   :  { %13245 = vmatpush3.msra.mxu1 %v1400_v57  ;;  %4821 = vmatmul.mubr.f32.vlgmr.msra.gmra.mrb[0].mxu0 %v14322_v29  ;;  %v14383_v62 = vand.u32 4294901760, %v4588_v22 }
 0x3ae   :  { %4830 = vmatpush1.msra.mxu0 %v14318_v28  ;;  %13246 = vmatprep.mubr.msk.f32.mxu1 %vm13893_vm2, %v13872_v7 }
 0x3af   :  { %4906 = vmatprep.subr.mxu0 %v4670_v35  ;;  %13249 = vmatprep.subr.mxu1 %v13872_v7  ;;  %v14387_v63 = vsub.f32 %v4588_v22, %v14383_v62 }
 0x3b0   :  { %4893 = vmatprep.mubr.f32.mxu0 %v13872_v7 }
 0x3b1   :  { %v5599_v1 = vand.u32 4294901760, %v14387_v63 }
 0x3b3   :  { %v5600_v4 = vsub.f32 %v14387_v63, %v5599_v1 }
 0x3b4   :  { %13247 = vmatmul.mubr.f32.vlgmr.msra.gmra.mrb[4].mxu1 %v14141_v0 }
 0x3b5   :  { %13250 = vmatpush3.msra.mxu1 %v1397_v46  ;;  %4897 = vmatmul.mubr.f32.vlgmr.msra.gmra.mrb[0].mxu0 %v14328_v33  ;;  %v5601_v53 = vand.u32 4294901760, %v5600_v4  ;;  %v1771_v4 = vsel %vm315_vm15, %v14051_v55, 0 }
 0x3b6   :  { %4910 = vmatpush1.msra.mxu0 %v4676_v36  ;;  %13251 = vmatprep.mubr.msk.f32.mxu1 %vm13893_vm2, %v13872_v7 }
 0x3b7   :  { %4982 = vmatprep.subr.mxu0 %v14307_v21  ;;  %13254 = vmatprep.subr.mxu1 %v13872_v7 }
 0x3b8   :  { %4973 = vmatprep.mubr.f32.mxu0 %v13872_v7 }
 0x3bc   :  { %13252 = vmatmul.mubr.f32.vlgmr.msra.gmra.mrb[4].mxu1 %v14145_v3  ;;  %v1769_v3 = vsel %vm315_vm15, %v14032_v43, 0  ;;  %v14420_v43 = vand.u32 4294901760, %v1767_v9 }
 0x3bd   :  { %13255 = vmatpush3.msra.mxu1 %v14347_v51  ;;  %4975 = vmatmul.mubr.f32.vlgmr.msra.gmra.mrb[0].mxu0 %v14305_v20  ;;  %v14407_v8 = vand.u32 4294901760, %v1769_v3 }
 0x3be   :  { %4984 = vmatpush1.msra.mxu0 %v14318_v28  ;;  %13256 = vmatprep.mubr.msk.f32.mxu1 %vm13893_vm2, %v13872_v7  ;;  %v14434_v10 = vsub.f32 %v1767_v9, %v14420_v43  ;;  %v5976_v28 = vpop.permute.xlu0 %5975 }
 0x3bf   :  { %13259 = vmatprep.subr.mxu1 %v13872_v7  ;;  %5047 = vmatprep.mubr.f32.mxu0 %v13872_v7  ;;  %v14424_v47 = vsub.f32 %v1769_v3, %v14407_v8  ;;  %v5984_v35 = vsel %vm175_vm10, %v5976_v28, %v14462_v31  ;;  %v1773_v3 = vsel %vm315_vm15, %v14064_v59, 0  ;;  %v14531_v59 = vand.u32 4294901760, %v1771_v4 }
 0x3c0   :  { %13329 = vmatprep.subr.mxu0 %v13872_v7  ;;  %v1863_v15 = vand.u32 4294901760, %v14434_v10  ;;  %v5991_v45 = vsel %vm315_vm15, %v5984_v35, 0  ;;  %v1775_v35 = vsel %vm315_vm15, %v14057_v58, 0 }
 0x3c1   :  { %v1857_v11 = vand.u32 4294901760, %v14424_v47  ;;  %v14481_v44 = vand.u32 4294901760, %v5991_v45 }
 0x3c2   :  { %v1864_v19 = vsub.f32 %v14434_v10, %v1863_v15 }
 0x3c3   :  { %v1858_v16 = vsub.f32 %v14424_v47, %v1857_v11  ;;  %v6078_v46 = vsub.f32 %v5991_v45, %v14481_v44 }
 0x3c4   :  { %13257 = vmatmul.mubr.f32.vlgmr.msra.gmra.mrb[4].mxu1 %v14151_v6  ;;  %v14427_v6 = vsub.f32 %v1765_v2, %v14411_v5  ;;  %v1865_v30 = vand.u32 4294901760, %v1864_v19  ;;  %v14519_v2 = vand.u32 4294901760, %v1773_v3  ;;  %v5997_v19 = vsel %vm315_vm15, %v14554_v18, 0 }
 0x3c5   :  { %13260 = vmatpush3.msra.mxu1 %v1398_v54  ;;  %5049 = vmatmul.mubr.f32.vlgmr.msra.gmra.mrb[0].mxu0 %v14305_v20  ;;  %v1859_v21 = vand.u32 4294901760, %v1858_v16  ;;  %v6079_v57 = vand.u32 4294901760, %v6078_v46 }
 0x3c6   :  { %13330 = vmatpush3.msra.mxu0 %v14383_v62  ;;  %13331 = vmatprep.mubr.msk.f32.mxu0 %vm13893_vm2, %v13872_v7  ;;  %v14439_v12 = vand.u32 4294901760, %v14427_v6  ;;  %v2321_v55 = vsub.f32 %v1773_v3, %v14519_v2 }
 0x3c7   :  { %13334 = vmatprep.subr.mxu0 %v13872_v7  ;;  %13261 = vmatprep.mubr.msk.f32.mxu1 %vm13893_vm2, %v13872_v7 }
 0x3c8   :  { %13264 = vmatprep.subr.mxu1 %v13872_v7  ;;  %v1847_v17 = vsub.f32 %v14427_v6, %v14439_v12 }
 0x3c9   :  { %13332 = vmatmul.mubr.f32.vlgmr.msra.gmra.mrb[2].mxu0 %v14343_v50 }
 0x3ca   :  { %13335 = vmatpush3.msra.mxu0 %v5601_v53  ;;  %13336 = vmatprep.mubr.msk.f32.mxu0 %vm13893_vm2, %v13872_v7  ;;  %v14458_v24 = vand.u32 4294901760, %v1847_v17 }
 0x3cb   :  { %13339 = vmatprep.subr.mxu0 %v13872_v7 }
 0x3cc   :  { %13262 = vmatmul.mubr.f32.vlgmr.msra.gmra.mrb[4].mxu1 %v14141_v0 }
 0x3cd   :  { %13265 = vmatpush3.msra.mxu1 %v14347_v51  ;;  %13266 = vmatprep.mubr.msk.f32.mxu1 %vm13893_vm2, %v13872_v7 }
 0x3ce   :  { %1778 = vmatprep.subr.mxu1 %v14407_v8 }
 0x3d1   :  { %13337 = vmatmul.mubr.f32.vlgmr.msra.gmra.mrb[2].mxu0 %v14305_v20 }
 0x3d2   :  { %13340 = vmatpush3.msra.mxu0 %v14387_v63  ;;  %13341 = vmatprep.mubr.msk.f32.mxu0 %vm13893_vm2, %v13872_v7  ;;  %v6080_v63 = vsub.f32 %v6078_v46, %v6079_v57 }
 0x3d3   :  { %13344 = vmatprep.subr.mxu0 %v13872_v7 }
 0x3d4   :  { %13267 = vmatmul.mubr.f32.vlgmr.msra.gmra.mrb[4].mxu1 %v14141_v0  ;;  %v5974_v0 = vpop.permute.xlu0 %5973  ;;  %v6081_v9 = vand.u32 4294901760, %v6080_v63 }
 0x3d5   :  { %1780 = vmatpush1.msra.mxu1 %v14420_v43  ;;  %1843 = vmatprep.mubr.f32.mxu1 %v13872_v7  ;;  %v5983_v36 = vsel %vm175_vm10, %v5974_v0, %v5976_v28 }
 0x3d6   :  { %1860 = vmatprep.subr.mxu1 %v1859_v21  ;;  %v5989_v48 = vsel %vm315_vm15, %v5983_v36, 0  ;;  %v14563_v21 = vand.u32 4294901760, %v5997_v19  ;;  %v14587_v36 = vand.u32 4294901760, %v1775_v35 }
 0x3d7   :  { %v14491_v51 = vand.u32 4294901760, %v5989_v48 }
 0x3d8   :  { %1849 = vmatmul.mubr.f32.vlgmr.msra.gmra.mrb[0].mxu1 %v14458_v24  ;;  %v14567_v28 = vsub.f32 %v5997_v19, %v14563_v21  ;;  %v2785_v58 = vsub.f32 %v1775_v35, %v14587_v36  ;;  %v3262_v19 = vsub.f32 %v14200_v38, %v3261_v40 }
 0x3d9   :  { %1866 = vmatpush1.msra.mxu1 %v1865_v30  ;;  %13342 = vmatmul.mubr.f32.vlgmr.msra.gmra.mrb[2].mxu0 %v14322_v29  ;;  %v14499_v54 = vsub.f32 %v5989_v48, %v14491_v51 }
 0x3da   :  { %13345 = vmatpush3.msra.mxu0 %v14383_v62  ;;  %1939 = vmatprep.subr.mxu1 %v14424_v47  ;;  %v7008_v30 = vand.u32 4294901760, %v14567_v28  ;;  %v2786_v45 = vand.u32 4294901760, %v2785_v58 }
 0x3db   :  { %1929 = vmatprep.mubr.f32.mxu1 %v13872_v7  ;;  %13346 = vmatprep.mubr.msk.f32.mxu0 %vm13893_vm2, %v13872_v7  ;;  %v6085_v22 = vand.u32 4294901760, %v14499_v54 }
 0x3dc   :  { %13349 = vmatprep.subr.mxu0 %v13872_v7  ;;  %v7009_v0 = vsub.f32 %v14567_v28, %v7008_v30  ;;  %v2787_v48 = vsub.f32 %v2785_v58, %v2786_v45 }
 0x3de   :  { %v7010_v39 = vand.u32 4294901760, %v7009_v0 }
 0x3e0   :  { %1931 = vmatmul.mubr.f32.vlgmr.msra.gmra.mrb[0].mxu1 %v14411_v5 }
 0x3e1   :  { %1942 = vmatpush1.msra.mxu1 %v14434_v10  ;;  %13347 = vmatmul.mubr.f32.vlgmr.msra.gmra.mrb[2].mxu0 %v14328_v33  ;;  %v2327_v10 = vsub.f32 %v1771_v4, %v14531_v59 }
 0x3e2   :  { %13350 = vmatpush3.msra.mxu0 %v5599_v1  ;;  %2015 = vmatprep.subr.mxu1 %v14407_v8  ;;  %v6069_v1 = vsub.f32 %v14495_v52, %v14503_v56 }
 0x3e3   :  { %2005 = vmatprep.mubr.f32.mxu1 %v13872_v7  ;;  %13351 = vmatprep.mubr.msk.f32.mxu0 %vm13893_vm2, %v13872_v7 }
 0x3e4   :  { %13354 = vmatprep.subr.mxu0 %v13872_v7  ;;  %v14526_v53 = vand.u32 4294901760, %v6069_v1 }
 0x3e8   :  { %2008 = vmatmul.mubr.f32.vlgmr.msra.gmra.mrb[0].mxu1 %v14427_v6 }
 0x3e9   :  { %2017 = vmatpush1.msra.mxu1 %v14420_v43  ;;  %13352 = vmatmul.mubr.f32.vlgmr.msra.gmra.mrb[2].mxu0 %v14305_v20 }
 0x3ea   :  { %13355 = vmatpush3.msra.mxu0 %v14383_v62  ;;  %2093 = vmatprep.subr.mxu1 %v1857_v11  ;;  %v6086_v62 = vsub.f32 %v14499_v54, %v6085_v22  ;;  %v2328_v11 = vand.u32 4294901760, %v2327_v10 }
 0x3eb   :  { %6000 = vmatprep.subr.mxu0 %v14481_v44  ;;  %2080 = vmatprep.mubr.f32.mxu1 %v13872_v7 }
 0x3ec   :  { %13356 = vmatprep.mubr.msk.f32.mxu0 %vm13893_vm2, %v13872_v7  ;;  %v6087_v47 = vand.u32 4294901760, %v6086_v62  ;;  %v2329_v16 = vsub.f32 %v2327_v10, %v2328_v11 }
 0x3f0   :  { %2084 = vmatmul.mubr.f32.vlgmr.msra.gmra.mrb[0].mxu1 %v14439_v12 }
 0x3f1   :  { %2097 = vmatpush1.msra.mxu1 %v1863_v15  ;;  %13357 = vmatmul.mubr.f32.vlgmr.msra.gmra.mrb[2].mxu0 %v14305_v20 }
 0x3f2   :  { %6002 = vmatpush1.msra.mxu0 %v14491_v51  ;;  %2169 = vmatprep.subr.mxu1 %v14407_v8  ;;  %v2322_v8 = vand.u32 4294901760, %v2321_v55 }
 0x3f3   :  { %6082 = vmatprep.subr.mxu0 %v6081_v9  ;;  %6065 = vmatprep.mubr.f32.mxu0 %v13872_v7 }
 0x3f4   :  { %2160 = vmatprep.mubr.f32.mxu1 %v13872_v7  ;;  %v2323_v15 = vsub.f32 %v2321_v55, %v2322_v8 }
 0x3f5   :  { %6071 = vmatmul.mubr.f32.vlgmr.msra.gmra.mrb[0].mxu0 %v14526_v53 }
 0x3f6   :  { %6088 = vmatpush1.msra.mxu0 %v6087_v47  ;;  %6151 = vmatprep.mubr.f32.mxu0 %v13872_v7  ;;  %v2324_v17 = vand.u32 4294901760, %v2323_v15 }
 0x3f7   :  { %6161 = vmatprep.subr.mxu0 %v6078_v46  ;;  %v2788_v46 = vand.u32 4294901760, %v2787_v48 }
 0x3f8   :  { %2162 = vmatmul.mubr.f32.vlgmr.msra.gmra.mrb[0].mxu1 %v14411_v5 }
 0x3f9   :  { %2171 = vmatpush1.msra.mxu1 %v14420_v43  ;;  %2234 = vmatprep.mubr.f32.mxu1 %v13872_v7  ;;  %v2330_v43 = vand.u32 4294901760, %v2329_v16 }
 0x3fa   :  { %2243 = vmatprep.subr.mxu1 %v14519_v2 }
 0x3fd   :  { %6153 = vmatmul.mubr.f32.vlgmr.msra.gmra.mrb[0].mxu0 %v14479_v49 }
 0x3fe   :  { %6164 = vmatpush1.msra.mxu0 %v14499_v54  ;;  %6227 = vmatprep.mubr.f32.mxu0 %v13872_v7 }
 0x3ff   :  { %6237 = vmatprep.subr.mxu0 %v14481_v44 }
 0x400   :  { %2236 = vmatmul.mubr.f32.vlgmr.msra.gmra.mrb[0].mxu1 %v14411_v5 }
 0x401   :  { %2245 = vmatpush1.msra.mxu1 %v14531_v59  ;;  %2308 = vmatprep.mubr.f32.mxu1 %v13872_v7 }
 0x402   :  { %2325 = vmatprep.subr.mxu1 %v2324_v17 }
 0x404   :  { %2314 = vmatmul.mubr.f32.vlgmr.msra.gmra.mrb[2].mxu1 %v14458_v24 }
 0x405   :  { %2331 = vmatpush1.msra.mxu1 %v2330_v43  ;;  %6230 = vmatmul.mubr.f32.vlgmr.msra.gmra.mrb[0].mxu0 %v14495_v52 }
 0x406   :  { %6239 = vmatpush1.msra.mxu0 %v14491_v51  ;;  %2404 = vmatprep.subr.mxu1 %v2321_v55 }
 0x407   :  { %6315 = vmatprep.subr.mxu0 %v6079_v57  ;;  %2394 = vmatprep.mubr.f32.mxu1 %v13872_v7 }
 0x408   :  { %6302 = vmatprep.mubr.f32.mxu0 %v13872_v7 }
 0x40c   :  { %2396 = vmatmul.mubr.f32.vlgmr.msra.gmra.mrb[2].mxu1 %v14411_v5 }
 0x40d   :  { %2407 = vmatpush1.msra.mxu1 %v2327_v10  ;;  %6306 = vmatmul.mubr.f32.vlgmr.msra.gmra.mrb[0].mxu0 %v14503_v56 }
 0x40e   :  { %6319 = vmatpush1.msra.mxu0 %v6085_v22  ;;  %2480 = vmatprep.subr.mxu1 %v14519_v2 }
 0x40f   :  { %6391 = vmatprep.subr.mxu0 %v14481_v44  ;;  %2470 = vmatprep.mubr.f32.mxu1 %v13872_v7  ;;  %v7381_v44 = vpop.permute.xlu0 %7380 }
 0x410   :  { %6382 = vmatprep.mubr.f32.mxu0 %v13872_v7 }
 0x413   :  { %v14611_v54 = vpop.permute.xlu0 %7386 }
 0x414   :  { %2473 = vmatmul.mubr.f32.vlgmr.msra.gmra.mrb[2].mxu1 %v14427_v6 }
 0x415   :  { %2482 = vmatpush1.msra.mxu1 %v14531_v59  ;;  %6384 = vmatmul.mubr.f32.vlgmr.msra.gmra.mrb[0].mxu0 %v14479_v49 }
 0x416   :  { %6393 = vmatpush1.msra.mxu0 %v14491_v51  ;;  %2558 = vmatprep.subr.mxu1 %v2322_v8  ;;  %v7385_v51 = vpop.permute.xlu1 %7384 }
 0x417   :  { %2545 = vmatprep.mubr.f32.mxu1 %v13872_v7  ;;  %6456 = vmatprep.mubr.f32.mxu0 %v13872_v7  ;;  %v7393_v57 = vsel %vm200_vm11, %v7385_v51, %v14611_v54 }
 0x418   :  { %13359 = vmatprep.subr.mxu0 %v13872_v7  ;;  %v7400_v63 = vsel %vm315_vm15, %v7393_v57, 0 }
 0x419   :  { %v14628_v62 = vand.u32 4294901760, %v7400_v63 }
 0x41a   :  { %v7383_v22 = vpop.permute.xlu1 %7382 }
 0x41b   :  { %v7392_v1 = vsel %vm200_vm11, %v7383_v22, %v7385_v51 }
 0x41c   :  { %2549 = vmatmul.mubr.f32.vlgmr.msra.gmra.mrb[2].mxu1 %v14439_v12 }
 0x41d   :  { %2562 = vmatpush1.msra.mxu1 %v2328_v11  ;;  %6458 = vmatmul.mubr.f32.vlgmr.msra.gmra.mrb[0].mxu0 %v14479_v49 }
 0x41e   :  { %13360 = vmatpush3.msra.mxu0 %v14563_v21  ;;  %2634 = vmatprep.subr.mxu1 %v14519_v2  ;;  %v7398_v2 = vsel %vm315_vm15, %v7392_v1, 0 }
 0x41f   :  { %13361 = vmatprep.mubr.msk.f32.mxu0 %vm13893_vm2, %v13872_v7  ;;  %13364 = vmatprep.subr.mxu0 %v13872_v7  ;;  %v14637_v4 = vand.u32 4294901760, %v7398_v2 }
 0x420   :  { %2625 = vmatprep.mubr.f32.mxu1 %v13872_v7 }
 0x421   :  { %13362 = vmatmul.mubr.f32.vlgmr.msra.gmra.mrb[2].mxu0 %v14526_v53  ;;  %v14645_v47 = vsub.f32 %v7398_v2, %v14637_v4 }
 0x422   :  { %13365 = vmatpush3.msra.mxu0 %v7010_v39  ;;  %13366 = vmatprep.mubr.msk.f32.mxu0 %vm13893_vm2, %v13872_v7 }
 0x423   :  { %13369 = vmatprep.subr.mxu0 %v13872_v7  ;;  %v7494_v8 = vand.u32 4294901760, %v14645_v47 }
 0x424   :  { %2627 = vmatmul.mubr.f32.vlgmr.msra.gmra.mrb[2].mxu1 %v14411_v5 }
 0x425   :  { %2636 = vmatpush1.msra.mxu1 %v14531_v59  ;;  %2699 = vmatprep.mubr.f32.mxu1 %v13872_v7  ;;  %v7487_v59 = vsub.f32 %v7400_v63, %v14628_v62  ;;  %v7495_v15 = vsub.f32 %v14645_v47, %v7494_v8 }
 0x426   :  { %13269 = vmatprep.subr.mxu1 %v13872_v7 }
 0x427   :  { %v7488_v10 = vand.u32 4294901760, %v7487_v59  ;;  %v7496_v43 = vand.u32 4294901760, %v7495_v15 }
 0x429   :  { %13367 = vmatmul.mubr.f32.vlgmr.msra.gmra.mrb[2].mxu0 %v14479_v49 }
 0x42a   :  { %13370 = vmatpush3.msra.mxu0 %v14567_v28  ;;  %13371 = vmatprep.mubr.msk.f32.mxu0 %vm13893_vm2, %v13872_v7  ;;  %v3263_v28 = vand.u32 4294901760, %v3262_v19 }
 0x42b   :  { %13374 = vmatprep.subr.mxu0 %v13872_v7 }
 0x42c   :  { %2701 = vmatmul.mubr.f32.vlgmr.msra.gmra.mrb[2].mxu1 %v14411_v5 }
 0x42d   :  { %13270 = vmatpush3.msra.mxu1 %v14587_v36  ;;  %13271 = vmatprep.mubr.msk.f32.mxu1 %vm13893_vm2, %v13872_v7 }
 0x42e   :  { %13274 = vmatprep.subr.mxu1 %v13872_v7 }
 0x430   :  { %13272 = vmatmul.mubr.f32.vlgmr.msra.gmra.mrb[4].mxu1 %v14458_v24  ;;  %v7396_v24 = vsel %vm376_vm1, %v7381_v44, 0 }
 0x431   :  { %13275 = vmatpush3.msra.mxu1 %v2788_v46  ;;  %13372 = vmatmul.mubr.f32.vlgmr.msra.gmra.mrb[2].mxu0 %v14495_v52  ;;  %v14626_v3 = vand.u32 4294901760, %v7396_v24 }
 0x432   :  { %13375 = vmatpush3.msra.mxu0 %v14563_v21  ;;  %13276 = vmatprep.mubr.msk.f32.mxu1 %vm13893_vm2, %v13872_v7 }
 0x433   :  { %13279 = vmatprep.subr.mxu1 %v13872_v7  ;;  %13376 = vmatprep.mubr.msk.f32.mxu0 %vm13893_vm2, %v13872_v7  ;;  %v14641_v9 = vsub.f32 %v7396_v24, %v14626_v3 }
 0x434   :  { %13379 = vmatprep.subr.mxu0 %v13872_v7 }
 0x435   :  { %v14649_v55 = vand.u32 4294901760, %v14641_v9 }
 0x437   :  { %v7478_v11 = vsub.f32 %v14641_v9, %v14649_v55 }
 0x438   :  { %13277 = vmatmul.mubr.f32.vlgmr.msra.gmra.mrb[4].mxu1 %v14411_v5 }
 0x439   :  { %13280 = vmatpush3.msra.mxu1 %v2785_v58  ;;  %13377 = vmatmul.mubr.f32.vlgmr.msra.gmra.mrb[2].mxu0 %v14503_v56  ;;  %v14666_v17 = vand.u32 4294901760, %v7478_v11 }
 0x43a   :  { %13380 = vmatpush3.msra.mxu0 %v7008_v30  ;;  %13281 = vmatprep.mubr.msk.f32.mxu1 %vm13893_vm2, %v13872_v7 }
 0x43b   :  { %13284 = vmatprep.subr.mxu1 %v13872_v7  ;;  %13381 = vmatprep.mubr.msk.f32.mxu0 %vm13893_vm2, %v13872_v7 }
 0x43c   :  { %13384 = vmatprep.subr.mxu0 %v13872_v7 }
 0x440   :  { %13282 = vmatmul.mubr.f32.vlgmr.msra.gmra.mrb[4].mxu1 %v14427_v6  ;;  %v7489_v6 = vsub.f32 %v7487_v59, %v7488_v10 }
 0x441   :  { %13285 = vmatpush3.msra.mxu1 %v14587_v36  ;;  %13382 = vmatmul.mubr.f32.vlgmr.msra.gmra.mrb[2].mxu0 %v14479_v49 }
 0x442   :  { %13385 = vmatpush3.msra.mxu0 %v14563_v21  ;;  %13286 = vmatprep.mubr.msk.f32.mxu1 %vm13893_vm2, %v13872_v7  ;;  %v7490_v16 = vand.u32 4294901760, %v7489_v6 }
 0x443   :  { %7409 = vmatprep.subr.mxu0 %v14628_v62  ;;  %13289 = vmatprep.subr.mxu1 %v13872_v7 }
 0x444   :  { %13386 = vmatprep.mubr.msk.f32.mxu0 %vm13893_vm2, %v13872_v7 }
 0x448   :  { %13287 = vmatmul.mubr.f32.vlgmr.msra.gmra.mrb[4].mxu1 %v14439_v12  ;;  %v3162_v12 = vpop.permute.xlu0 %3161 }
 0x449   :  { %13290 = vmatpush3.msra.mxu1 %v2786_v45  ;;  %13387 = vmatmul.mubr.f32.vlgmr.msra.gmra.mrb[2].mxu0 %v14479_v49  ;;  %v3168_v21 = vsel %vm125_vm8, %v3162_v12, %v14208_v41  ;;  %v3167_v40 = vsel %vm125_vm8, %v14182_v27, %v3162_v12 }
 0x44a   :  { %7411 = vmatpush1.msra.mxu0 %v14637_v4  ;;  %7474 = vmatprep.mubr.f32.mxu0 %v13872_v7  ;;  %v3177_v30 = vsel %vm315_vm15, %v3168_v21, 0  ;;  %v3175_v0 = vsel %vm315_vm15, %v3167_v40, 0 }
 0x44b   :  { %7491 = vmatprep.subr.mxu0 %v7490_v16  ;;  %13291 = vmatprep.mubr.msk.f32.mxu1 %vm13893_vm2, %v13872_v7  ;;  %v14699_v35 = vand.u32 4294901760, %v3177_v30  ;;  %v14705_v27 = vand.u32 4294901760, %v3175_v0 }
 0x44c   :  { %13294 = vmatprep.subr.mxu1 %v13872_v7  ;;  %v4571_v22 = vpop.permute.xlu0 %4570 }
 0x44d   :  { %7480 = vmatmul.mubr.f32.vlgmr.msra.gmra.mrb[0].mxu0 %v14666_v17  ;;  %v4577_v24 = vsel %vm150_vm9, %v4571_v22, %v14373_v60  ;;  %v4576_v60 = vsel %vm150_vm9, %v14291_v14, %v4571_v22 }
 0x44e   :  { %7497 = vmatpush1.msra.mxu0 %v7496_v43  ;;  %7560 = vmatprep.mubr.f32.mxu0 %v13872_v7 }
 0x44f   :  { %7570 = vmatprep.subr.mxu0 %v7487_v59 }
 0x450   :  { %13292 = vmatmul.mubr.f32.vlgmr.msra.gmra.mrb[4].mxu1 %v14411_v5  ;;  %v8794_v1 = vpop.permute.xlu0 %8793 }
 0x451   :  { %13295 = vmatpush3.msra.mxu1 %v14587_v36  ;;  %13296 = vmatprep.mubr.msk.f32.mxu1 %vm13893_vm2, %v13872_v7 }
 0x452   :  { %3182 = vmatprep.subr.mxu1 %v14191_v32  ;;  %v3268_v32 = vsub.f32 %v14194_v34, %v3267_v42  ;;  %v14710_v42 = vpop.permute.xlu1 %7390 }
 0x454   :  { %v3269_v41 = vand.u32 4294901760, %v3268_v32 }
 0x455   :  { %7562 = vmatmul.mubr.f32.vlgmr.msra.gmra.mrb[0].mxu0 %v14626_v3 }
 0x456   :  { %7573 = vmatpush1.msra.mxu0 %v14645_v47  ;;  %7636 = vmatprep.mubr.f32.mxu0 %v13872_v7  ;;  %v8790_v63 = vpop.permute.xlu1 %8789 }
 0x457   :  { %7646 = vmatprep.subr.mxu0 %v14628_v62 }
 0x458   :  { %13297 = vmatmul.mubr.f32.vlgmr.msra.gmra.mrb[4].mxu1 %v14411_v5  ;;  %v14713_v5 = vsub.f32 %v3175_v0, %v14705_v27 }
 0x459   :  { %3184 = vmatpush1.msra.mxu1 %v14177_v25  ;;  %3247 = vmatprep.mubr.f32.mxu1 %v13872_v7  ;;  %v3725_v25 = vsub.f32 %v3177_v30, %v14699_v35 }
 0x45a   :  { %3264 = vmatprep.subr.mxu1 %v3263_v28  ;;  %v3732_v39 = vand.u32 4294901760, %v14713_v5  ;;  %v14768_v2 = vpop.permute.xlu1 %8795 }
 0x45b   :  { %v3726_v36 = vand.u32 4294901760, %v3725_v25  ;;  %v8802_v59 = vsel %vm225_vm12, %v8794_v1, %v14768_v2 }
 0x45c   :  { %3253 = vmatmul.mubr.f32.vlgmr.msra.gmra.mrb[0].mxu1 %v14260_v61  ;;  %v3733_v48 = vsub.f32 %v14713_v5, %v3732_v39 }
 0x45d   :  { %3270 = vmatpush1.msra.mxu1 %v3269_v41  ;;  %7639 = vmatmul.mubr.f32.vlgmr.msra.gmra.mrb[0].mxu0 %v14641_v9  ;;  %v3727_v45 = vsub.f32 %v3725_v25, %v3726_v36 }
 0x45e   :  { %7648 = vmatpush1.msra.mxu0 %v14637_v4  ;;  %3343 = vmatprep.subr.mxu1 %v14200_v38  ;;  %v7406_v38 = vsel %vm315_vm15, %v14710_v42, 0  ;;  %v3734_v51 = vand.u32 4294901760, %v3733_v48 }
 0x45f   :  { %7724 = vmatprep.subr.mxu0 %v7488_v10  ;;  %3333 = vmatprep.mubr.f32.mxu1 %v13872_v7  ;;  %v14724_v58 = vand.u32 4294901760, %v7406_v38  ;;  %v3728_v44 = vand.u32 4294901760, %v3727_v45  ;;  %v8805_v10 = vsel %vm376_vm1, %v8790_v63, 0 }
 0x460   :  { %7711 = vmatprep.mubr.f32.mxu0 %v13872_v7  ;;  %v14794_v16 = vand.u32 4294901760, %v8805_v10 }
 0x462   :  { %v14814_v32 = vsub.f32 %v8805_v10, %v14794_v16 }
 0x464   :  { %3335 = vmatmul.mubr.f32.vlgmr.msra.gmra.mrb[0].mxu1 %v14173_v23  ;;  %v14823_v0 = vand.u32 4294901760, %v14814_v32 }
 0x465   :  { %3346 = vmatpush1.msra.mxu1 %v14194_v34  ;;  %7715 = vmatmul.mubr.f32.vlgmr.msra.gmra.mrb[0].mxu0 %v14649_v55  ;;  %v14729_v34 = vsub.f32 %v7406_v38, %v14724_v58 }
 0x466   :  { %7728 = vmatpush1.msra.mxu0 %v7494_v8  ;;  %3647 = vmatprep.subr.mxu1 %v14699_v35  ;;  %v8809_v8 = vsel %vm315_vm15, %v8802_v59, 0 }
 0x467   :  { %7800 = vmatprep.subr.mxu0 %v14628_v62  ;;  %3409 = vmatprep.mubr.f32.mxu1 %v13872_v7  ;;  %v8417_v46 = vand.u32 4294901760, %v14729_v34  ;;  %v14796_v43 = vand.u32 4294901760, %v8809_v8 }
 0x468   :  { %7791 = vmatprep.mubr.f32.mxu0 %v13872_v7 }
 0x469   :  { %v8418_v57 = vsub.f32 %v14729_v34, %v8417_v46  ;;  %v8896_v28 = vsub.f32 %v8809_v8, %v14796_v43 }
 0x46c   :  { %3412 = vmatmul.mubr.f32.vlgmr.msra.gmra.mrb[0].mxu1 %v14180_v26 }
 0x46d   :  { %3649 = vmatpush1.msra.mxu1 %v14705_v27  ;;  %7793 = vmatmul.mubr.f32.vlgmr.msra.gmra.mrb[0].mxu0 %v14626_v3 }
 0x46e   :  { %7802 = vmatpush1.msra.mxu0 %v14637_v4  ;;  %3729 = vmatprep.subr.mxu1 %v3728_v44  ;;  %v8792_v4 = vpop.permute.xlu0 %8791 }
 0x46f   :  { %3712 = vmatprep.mubr.f32.mxu1 %v13872_v7  ;;  %7865 = vmatprep.mubr.f32.mxu0 %v13872_v7  ;;  %v8801_v47 = vsel %vm225_vm12, %v8792_v4, %v8794_v1 }
 0x470   :  { %3718 = vmatmul.mubr.f32.vlgmr.msra.gmra.mrb[2].mxu1 %v14260_v61  ;;  %13389 = vmatprep.subr.mxu0 %v13872_v7  ;;  %v8419_v61 = vand.u32 4294901760, %v8418_v57  ;;  %v8807_v15 = vsel %vm315_vm15, %v8801_v47, 0 }
 0x471   :  { %3735 = vmatpush1.msra.mxu1 %v3734_v51  ;;  %3798 = vmatprep.mubr.f32.mxu1 %v13872_v7  ;;  %v14807_v19 = vand.u32 4294901760, %v8807_v15 }
 0x472   :  { %3808 = vmatprep.subr.mxu1 %v3725_v25 }
 0x473   :  { %v14819_v30 = vsub.f32 %v8807_v15, %v14807_v19 }
 0x475   :  { %7867 = vmatmul.mubr.f32.vlgmr.msra.gmra.mrb[0].mxu0 %v14626_v3 }
 0x476   :  { %13390 = vmatpush3.msra.mxu0 %v14724_v58  ;;  %13391 = vmatprep.mubr.msk.f32.mxu0 %vm13893_vm2, %v13872_v7 }
 0x477   :  { %13394 = vmatprep.subr.mxu0 %v13872_v7 }
 0x478   :  { %3800 = vmatmul.mubr.f32.vlgmr.msra.gmra.mrb[2].mxu1 %v14173_v23 }
 0x479   :  { %3811 = vmatpush1.msra.mxu1 %v14713_v5  ;;  %13392 = vmatmul.mubr.f32.vlgmr.msra.gmra.mrb[2].mxu0 %v14666_v17  ;;  %v8887_v5 = vsub.f32 %v14814_v32, %v14823_v0 }
 0x47a   :  { %13395 = vmatpush3.msra.mxu0 %v8419_v61  ;;  %3884 = vmatprep.subr.mxu1 %v14699_v35 }
 0x47b   :  { %3874 = vmatprep.mubr.f32.mxu1 %v13872_v7  ;;  %13396 = vmatprep.mubr.msk.f32.mxu0 %vm13893_vm2, %v13872_v7 }
 0x47c   :  { %13399 = vmatprep.subr.mxu0 %v13872_v7 }
 0x480   :  { %3877 = vmatmul.mubr.f32.vlgmr.msra.gmra.mrb[2].mxu1 %v14180_v26  ;;  %v4586_v26 = vsel %vm315_vm15, %v4577_v24, 0 }
 0x481   :  { %3886 = vmatpush1.msra.mxu1 %v14705_v27  ;;  %13397 = vmatmul.mubr.f32.vlgmr.msra.gmra.mrb[2].mxu0 %v14626_v3  ;;  %v14766_v62 = vand.u32 4294901760, %v4586_v26 }
 0x482   :  { %13400 = vmatpush3.msra.mxu0 %v14729_v34  ;;  %3962 = vmatprep.subr.mxu1 %v3726_v36 }
 0x483   :  { %3949 = vmatprep.mubr.f32.mxu1 %v13872_v7  ;;  %13401 = vmatprep.mubr.msk.f32.mxu0 %vm13893_vm2, %v13872_v7  ;;  %v14783_v14 = vsub.f32 %v4586_v26, %v14766_v62 }
 0x484   :  { %13404 = vmatprep.subr.mxu0 %v13872_v7 }
 0x485   :  { %v5135_v11 = vand.u32 4294901760, %v14783_v14 }
 0x487   :  { %v5136_v21 = vsub.f32 %v14783_v14, %v5135_v11 }
 0x488   :  { %3953 = vmatmul.mubr.f32.vlgmr.msra.gmra.mrb[2].mxu1 %v14197_v37  ;;  %v4584_v37 = vsel %vm315_vm15, %v4576_v60, 0 }
 0x489   :  { %3966 = vmatpush1.msra.mxu1 %v3732_v39  ;;  %13402 = vmatmul.mubr.f32.vlgmr.msra.gmra.mrb[2].mxu0 %v14641_v9  ;;  %v14789_v6 = vand.u32 4294901760, %v4584_v37  ;;  %v5137_v41 = vand.u32 4294901760, %v5136_v21 }
 0x48a   :  { %13405 = vmatpush3.msra.mxu0 %v14724_v58  ;;  %4038 = vmatprep.subr.mxu1 %v14699_v35  ;;  %v8897_v35 = vand.u32 4294901760, %v8896_v28 }
 0x48b   :  { %4029 = vmatprep.mubr.f32.mxu1 %v13872_v7  ;;  %13406 = vmatprep.mubr.msk.f32.mxu0 %vm13893_vm2, %v13872_v7  ;;  %v14802_v12 = vsub.f32 %v4584_v37, %v14789_v6 }
 0x48c   :  { %13409 = vmatprep.subr.mxu0 %v13872_v7  ;;  %v8898_v25 = vsub.f32 %v8896_v28, %v8897_v35 }
 0x48d   :  { %v5141_v40 = vand.u32 4294901760, %v14802_v12 }
 0x48e   :  { %v8899_v39 = vand.u32 4294901760, %v8898_v25 }
 0x490   :  { %4031 = vmatmul.mubr.f32.vlgmr.msra.gmra.mrb[2].mxu1 %v14173_v23 }
 0x491   :  { %4040 = vmatpush1.msra.mxu1 %v14705_v27  ;;  %13407 = vmatmul.mubr.f32.vlgmr.msra.gmra.mrb[2].mxu0 %v14649_v55  ;;  %v5142_v27 = vsub.f32 %v14802_v12, %v5141_v40 }
 0x492   :  { %13410 = vmatpush3.msra.mxu0 %v8417_v46  ;;  %5056 = vmatprep.subr.mxu1 %v14766_v62 }
 0x493   :  { %4103 = vmatprep.mubr.f32.mxu1 %v13872_v7  ;;  %13411 = vmatprep.mubr.msk.f32.mxu0 %vm13893_vm2, %v13872_v7  ;;  %v5143_v36 = vand.u32 4294901760, %v5142_v27 }
 0x494   :  { %13414 = vmatprep.subr.mxu0 %v13872_v7 }
 0x498   :  { %4105 = vmatmul.mubr.f32.vlgmr.msra.gmra.mrb[2].mxu1 %v14173_v23  ;;  %v8903_v23 = vand.u32 4294901760, %v14819_v30 }
 0x499   :  { %5058 = vmatpush1.msra.mxu1 %v14789_v6  ;;  %13412 = vmatmul.mubr.f32.vlgmr.msra.gmra.mrb[2].mxu0 %v14626_v3 }
 0x49a   :  { %13415 = vmatpush3.msra.mxu0 %v14724_v58  ;;  %5138 = vmatprep.subr.mxu1 %v5137_v41  ;;  %v8904_v38 = vsub.f32 %v14819_v30, %v8903_v23  ;;  %v14839_v58 = vand.u32 4294901760, %v8887_v5 }
 0x49b   :  { %8818 = vmatprep.subr.mxu0 %v14796_v43  ;;  %5121 = vmatprep.mubr.f32.mxu1 %v13872_v7 }
 0x49c   :  { %13416 = vmatprep.mubr.msk.f32.mxu0 %vm13893_vm2, %v13872_v7  ;;  %v8905_v45 = vand.u32 4294901760, %v8904_v38 }
 0x4a0   :  { %5127 = vmatmul.mubr.f32.vlgmr.msra.gmra.mrb[2].mxu1 %v14343_v50  ;;  %v5980_v50 = vpop.permute.xlu1 %5979 }
 0x4a1   :  { %5144 = vmatpush1.msra.mxu1 %v5143_v36  ;;  %13417 = vmatmul.mubr.f32.vlgmr.msra.gmra.mrb[2].mxu0 %v14626_v3  ;;  %v5986_v48 = vsel %vm175_vm10, %v5980_v50, %v14554_v18  ;;  %v5985_v44 = vsel %vm175_vm10, %v14462_v31, %v5980_v50  ;;  %v14872_v18 = vpop.permute.xlu0 %8799 }
 0x4a2   :  { %8820 = vmatpush1.msra.mxu0 %v14807_v19  ;;  %5217 = vmatprep.subr.mxu1 %v14783_v14  ;;  %v5995_v34 = vsel %vm315_vm15, %v5986_v48, 0  ;;  %v5993_v51 = vsel %vm315_vm15, %v5985_v44, 0  ;;  %v8815_v57 = vsel %vm315_vm15, %v14872_v18, 0 }
 0x4a3   :  { %8900 = vmatprep.subr.mxu0 %v8899_v39  ;;  %8883 = vmatprep.mubr.f32.mxu0 %v13872_v7  ;;  %v14884_v31 = vand.u32 4294901760, %v8815_v57 }
 0x4a4   :  { %5207 = vmatprep.mubr.f32.mxu1 %v13872_v7  ;;  %v7389_v37 = vpop.permute.xlu1 %7388 }
 0x4a5   :  { %8889 = vmatmul.mubr.f32.vlgmr.msra.gmra.mrb[0].mxu0 %v14839_v58  ;;  %v14894_v24 = vsub.f32 %v8815_v57, %v14884_v31  ;;  %v7395_v10 = vsel %vm200_vm11, %v7389_v37, %v14710_v42 }
 0x4a6   :  { %8906 = vmatpush1.msra.mxu0 %v8905_v45  ;;  %8969 = vmatprep.mubr.f32.mxu0 %v13872_v7 }
 0x4a7   :  { %8979 = vmatprep.subr.mxu0 %v8896_v28  ;;  %v9826_v1 = vand.u32 4294901760, %v14894_v24 }
 0x4a8   :  { %5209 = vmatmul.mubr.f32.vlgmr.msra.gmra.mrb[2].mxu1 %v14305_v20  ;;  %v10203_v14 = vpop.permute.xlu1 %10202 }
 0x4a9   :  { %5220 = vmatpush1.msra.mxu1 %v14802_v12  ;;  %5283 = vmatprep.mubr.f32.mxu1 %v13872_v7  ;;  %v9827_v4 = vsub.f32 %v14894_v24, %v9826_v1 }
 0x4aa   :  { %5293 = vmatprep.subr.mxu1 %v14766_v62 }
 0x4ab   :  { %v9828_v59 = vand.u32 4294901760, %v9827_v4 }
 0x4ad   :  { %8971 = vmatmul.mubr.f32.vlgmr.msra.gmra.mrb[0].mxu0 %v14794_v16 }
 0x4ae   :  { %8982 = vmatpush1.msra.mxu0 %v14819_v30  ;;  %9045 = vmatprep.mubr.f32.mxu0 %v13872_v7 }
 0x4af   :  { %9055 = vmatprep.subr.mxu0 %v14796_v43 }
 0x4b0   :  { %5286 = vmatmul.mubr.f32.vlgmr.msra.gmra.mrb[2].mxu1 %v14322_v29  ;;  %v14866_v29 = vand.u32 4294901760, %v5995_v34 }
 0x4b1   :  { %5295 = vmatpush1.msra.mxu1 %v14789_v6  ;;  %5358 = vmatprep.mubr.f32.mxu1 %v13872_v7 }
 0x4b2   :  { %5371 = vmatprep.subr.mxu1 %v5135_v11  ;;  %v6543_v46 = vsub.f32 %v5995_v34, %v14866_v29 }
 0x4b4   :  { %v6544_v61 = vand.u32 4294901760, %v6543_v46 }
 0x4b5   :  { %9048 = vmatmul.mubr.f32.vlgmr.msra.gmra.mrb[0].mxu0 %v14814_v32 }
 0x4b6   :  { %9057 = vmatpush1.msra.mxu0 %v14807_v19  ;;  %9120 = vmatprep.mubr.f32.mxu0 %v13872_v7  ;;  %v6545_v63 = vsub.f32 %v6543_v46, %v6544_v61 }
 0x4b7   :  { %9133 = vmatprep.subr.mxu0 %v8897_v35 }
 0x4b8   :  { %5362 = vmatmul.mubr.f32.vlgmr.msra.gmra.mrb[2].mxu1 %v14328_v33  ;;  %v14881_v33 = vand.u32 4294901760, %v5993_v51 }
 0x4b9   :  { %5375 = vmatpush1.msra.mxu1 %v5141_v40  ;;  %5438 = vmatprep.mubr.f32.mxu1 %v13872_v7 }
 0x4ba   :  { %5447 = vmatprep.subr.mxu1 %v14766_v62  ;;  %v14891_v22 = vsub.f32 %v5993_v51, %v14881_v33  ;;  %v6546_v62 = vand.u32 4294901760, %v6545_v63 }
 0x4bc   :  { %v6550_v26 = vand.u32 4294901760, %v14891_v22 }
 0x4bd   :  { %9124 = vmatmul.mubr.f32.vlgmr.msra.gmra.mrb[0].mxu0 %v14823_v0 }
 0x4be   :  { %9137 = vmatpush1.msra.mxu0 %v8903_v23  ;;  %9200 = vmatprep.mubr.f32.mxu0 %v13872_v7  ;;  %v6551_v60 = vsub.f32 %v14891_v22, %v6550_v26 }
 0x4bf   :  { %9209 = vmatprep.subr.mxu0 %v14796_v43 }
 0x4c0   :  { %5440 = vmatmul.mubr.f32.vlgmr.msra.gmra.mrb[2].mxu1 %v14305_v20 }
 0x4c1   :  { %5449 = vmatpush1.msra.mxu1 %v14789_v6  ;;  %5512 = vmatprep.mubr.f32.mxu1 %v13872_v7  ;;  %v10201_v6 = vpop.permute.xlu1 %10200 }
 0x4c2   :  { %6465 = vmatprep.subr.mxu1 %v14866_v29  ;;  %v10210_v15 = vsel %vm250_vm13, %v10201_v6, %v10203_v14 }
 0x4c3   :  { %v10216_v28 = vsel %vm315_vm15, %v10210_v15, 0 }
 0x4c5   :  { %9202 = vmatmul.mubr.f32.vlgmr.msra.gmra.mrb[0].mxu0 %v14794_v16 }
 0x4c6   :  { %9211 = vmatpush1.msra.mxu0 %v14807_v19  ;;  %9274 = vmatprep.mubr.f32.mxu0 %v13872_v7  ;;  %v7394_v19 = vsel %vm200_vm11, %v14611_v54, %v7389_v37  ;;  %v14964_v54 = vand.u32 4294901760, %v10216_v28 }
 0x4c7   :  { %13419 = vmatprep.subr.mxu0 %v13872_v7 }
 0x4c8   :  { %5514 = vmatmul.mubr.f32.vlgmr.msra.gmra.mrb[2].mxu1 %v14305_v20  ;;  %v6552_v20 = vand.u32 4294901760, %v6551_v60  ;;  %v14974_v27 = vsub.f32 %v10216_v28, %v14964_v54 }
 0x4c9   :  { %6467 = vmatpush1.msra.mxu1 %v14881_v33  ;;  %6530 = vmatprep.mubr.f32.mxu1 %v13872_v7 }
 0x4ca   :  { %6547 = vmatprep.subr.mxu1 %v6546_v62  ;;  %v10312_v38 = vand.u32 4294901760, %v14974_v27 }
 0x4cd   :  { %9276 = vmatmul.mubr.f32.vlgmr.msra.gmra.mrb[0].mxu0 %v14794_v16 }
 0x4ce   :  { %13420 = vmatpush3.msra.mxu0 %v14884_v31  ;;  %13421 = vmatprep.mubr.msk.f32.mxu0 %vm13893_vm2, %v13872_v7 }
 0x4cf   :  { %13424 = vmatprep.subr.mxu0 %v13872_v7 }
 0x4d0   :  { %6536 = vmatmul.mubr.f32.vlgmr.msra.gmra.mrb[2].mxu1 %v14526_v53  ;;  %v10199_v53 = vpop.permute.xlu0 %10198 }
 0x4d1   :  { %6553 = vmatpush1.msra.mxu1 %v6552_v20  ;;  %13422 = vmatmul.mubr.f32.vlgmr.msra.gmra.mrb[2].mxu0 %v14839_v58  ;;  %v10214_v11 = vsel %vm376_vm1, %v10199_v53, 0 }
 0x4d2   :  { %13425 = vmatpush3.msra.mxu0 %v9828_v59  ;;  %6626 = vmatprep.subr.mxu1 %v6543_v46  ;;  %v14948_v12 = vand.u32 4294901760, %v10214_v11 }
 0x4d3   :  { %6616 = vmatprep.mubr.f32.mxu1 %v13872_v7  ;;  %13426 = vmatprep.mubr.msk.f32.mxu0 %vm13893_vm2, %v13872_v7 }
 0x4d4   :  { %13429 = vmatprep.subr.mxu0 %v13872_v7  ;;  %v14930_v47 = vpop.permute.xlu0 %10204  ;;  %v14968_v30 = vsub.f32 %v10214_v11, %v14948_v12 }
 0x4d5   :  { %v10211_v8 = vsel %vm250_vm13, %v10203_v14, %v14930_v47 }
 0x4d6   :  { %v10218_v42 = vsel %vm315_vm15, %v10211_v8, 0  ;;  %v14979_v25 = vand.u32 4294901760, %v14968_v30 }
 0x4d7   :  { %v14952_v21 = vand.u32 4294901760, %v10218_v42 }
 0x4d8   :  { %6618 = vmatmul.mubr.f32.vlgmr.msra.gmra.mrb[2].mxu1 %v14479_v49  ;;  %v10296_v50 = vsub.f32 %v14968_v30, %v14979_v25 }
 0x4d9   :  { %6629 = vmatpush1.msra.mxu1 %v14891_v22  ;;  %13427 = vmatmul.mubr.f32.vlgmr.msra.gmra.mrb[2].mxu0 %v14794_v16  ;;  %v10305_v41 = vsub.f32 %v10218_v42, %v14952_v21 }
 0x4da   :  { %13430 = vmatpush3.msra.mxu0 %v14894_v24  ;;  %6702 = vmatprep.subr.mxu1 %v14866_v29  ;;  %v14998_v51 = vand.u32 4294901760, %v10296_v50 }
 0x4db   :  { %6692 = vmatprep.mubr.f32.mxu1 %v13872_v7  ;;  %13431 = vmatprep.mubr.msk.f32.mxu0 %vm13893_vm2, %v13872_v7  ;;  %v10306_v5 = vand.u32 4294901760, %v10305_v41 }
 0x4dc   :  { %13434 = vmatprep.subr.mxu0 %v13872_v7 }
 0x4dd   :  { %v10307_v45 = vsub.f32 %v10305_v41, %v10306_v5 }
 0x4df   :  { %v10308_v44 = vand.u32 4294901760, %v10307_v45 }
 0x4e0   :  { %6695 = vmatmul.mubr.f32.vlgmr.msra.gmra.mrb[2].mxu1 %v14495_v52  ;;  %v7404_v52 = vsel %vm315_vm15, %v7395_v10, 0 }
 0x4e1   :  { %6704 = vmatpush1.msra.mxu1 %v14881_v33  ;;  %13432 = vmatmul.mubr.f32.vlgmr.msra.gmra.mrb[2].mxu0 %v14814_v32  ;;  %v14945_v43 = vand.u32 4294901760, %v7404_v52 }
 0x4e2   :  { %13435 = vmatpush3.msra.mxu0 %v14884_v31  ;;  %6780 = vmatprep.subr.mxu1 %v6544_v61 }
 0x4e3   :  { %6767 = vmatprep.mubr.f32.mxu1 %v13872_v7  ;;  %13436 = vmatprep.mubr.msk.f32.mxu0 %vm13893_vm2, %v13872_v7  ;;  %v14962_v40 = vsub.f32 %v7404_v52, %v14945_v43 }
 0x4e4   :  { %13439 = vmatprep.subr.mxu0 %v13872_v7 }
 0x4e5   :  { %v7953_v23 = vand.u32 4294901760, %v14962_v40 }
 0x4e7   :  { %v7954_v39 = vsub.f32 %v14962_v40, %v7953_v23 }
 0x4e8   :  { %6771 = vmatmul.mubr.f32.vlgmr.msra.gmra.mrb[2].mxu1 %v14503_v56  ;;  %v7402_v56 = vsel %vm315_vm15, %v7394_v19, 0 }
 0x4e9   :  { %6784 = vmatpush1.msra.mxu1 %v6550_v26  ;;  %13437 = vmatmul.mubr.f32.vlgmr.msra.gmra.mrb[2].mxu0 %v14823_v0  ;;  %v14971_v35 = vand.u32 4294901760, %v7402_v56  ;;  %v7955_v34 = vand.u32 4294901760, %v7954_v39 }
 0x4ea   :  { %13440 = vmatpush3.msra.mxu0 %v9826_v1  ;;  %6856 = vmatprep.subr.mxu1 %v14866_v29  ;;  %v10313_v29 = vsub.f32 %v14974_v27, %v10312_v38 }
 0x4eb   :  { %6847 = vmatprep.mubr.f32.mxu1 %v13872_v7  ;;  %13441 = vmatprep.mubr.msk.f32.mxu0 %vm13893_vm2, %v13872_v7  ;;  %v7958_v36 = vsub.f32 %v7402_v56, %v14971_v35 }
 0x4ec   :  { %13444 = vmatprep.subr.mxu0 %v13872_v7  ;;  %v10314_v57 = vand.u32 4294901760, %v10313_v29 }
 0x4ed   :  { %v7959_v48 = vand.u32 4294901760, %v7958_v36 }
 0x4ef   :  { %v7960_v46 = vsub.f32 %v7958_v36, %v7959_v48 }
 0x4f0   :  { %6849 = vmatmul.mubr.f32.vlgmr.msra.gmra.mrb[2].mxu1 %v14479_v49 }
 0x4f1   :  { %6858 = vmatpush1.msra.mxu1 %v14881_v33  ;;  %13442 = vmatmul.mubr.f32.vlgmr.msra.gmra.mrb[2].mxu0 %v14794_v16 }
 0x4f2   :  { %13445 = vmatpush3.msra.mxu0 %v14884_v31  ;;  %7874 = vmatprep.subr.mxu1 %v14945_v43  ;;  %v15023_v31 = vpop.permute.xlu1 %10208 }
 0x4f3   :  { %10227 = vmatprep.subr.mxu0 %v14952_v21  ;;  %6921 = vmatprep.mubr.f32.mxu1 %v13872_v7  ;;  %v10224_v22 = vsel %vm315_vm15, %v15023_v31, 0 }
 0x4f4   :  { %13446 = vmatprep.mubr.msk.f32.mxu0 %vm13893_vm2, %v13872_v7  ;;  %v15033_v24 = vand.u32 4294901760, %v10224_v22 }
 0x4f6   :  { %v15045_v1 = vsub.f32 %v10224_v22, %v15033_v24  ;;  %v11608_v52 = vpop.permute.xlu1 %11607 }
 0x4f7   :  { %v11623_v19 = vsel %vm376_vm1, %v11608_v52, 0 }
 0x4f8   :  { %6923 = vmatmul.mubr.f32.vlgmr.msra.gmra.mrb[2].mxu1 %v14479_v49  ;;  %v7961_v49 = vand.u32 4294901760, %v7960_v46 }
 0x4f9   :  { %7876 = vmatpush1.msra.mxu1 %v14971_v35  ;;  %13447 = vmatmul.mubr.f32.vlgmr.msra.gmra.mrb[2].mxu0 %v14794_v16 }
 0x4fa   :  { %10229 = vmatpush1.msra.mxu0 %v14964_v54  ;;  %7956 = vmatprep.subr.mxu1 %v7955_v34  ;;  %v15092_v42 = vpop.permute.xlu1 %11613 }
 0x4fb   :  { %10309 = vmatprep.subr.mxu0 %v10308_v44  ;;  %10292 = vmatprep.mubr.f32.mxu0 %v13872_v7 }
 0x4fc   :  { %7939 = vmatprep.mubr.f32.mxu1 %v13872_v7 }
 0x4fd   :  { %10298 = vmatmul.mubr.f32.vlgmr.msra.gmra.mrb[0].mxu0 %v14998_v51 }
 0x4fe   :  { %10315 = vmatpush1.msra.mxu0 %v10314_v57  ;;  %10378 = vmatprep.mubr.f32.mxu0 %v13872_v7 }
 0x4ff   :  { %10388 = vmatprep.subr.mxu0 %v10305_v41 }
 0x500   :  { %7945 = vmatmul.mubr.f32.vlgmr.msra.gmra.mrb[2].mxu1 %v14666_v17  ;;  %v8798_v17 = vpop.permute.xlu0 %8797 }
 0x501   :  { %7962 = vmatpush1.msra.mxu1 %v7961_v49  ;;  %8025 = vmatprep.mubr.f32.mxu1 %v13872_v7  ;;  %v8804_v33 = vsel %vm225_vm12, %v8798_v17, %v14872_v18  ;;  %v8803_v18 = vsel %vm225_vm12, %v14768_v2, %v8798_v17  ;;  %v11235_v2 = vand.u32 4294901760, %v15045_v1 }
 0x502   :  { %8035 = vmatprep.subr.mxu1 %v14962_v40  ;;  %v8813_v61 = vsel %vm315_vm15, %v8804_v33, 0  ;;  %v8811_v63 = vsel %vm315_vm15, %v8803_v18, 0 }
 0x503   :  { %v11236_v4 = vsub.f32 %v15045_v1, %v11235_v2 }
 0x504   :  { %v10207_v8 = vpop.permute.xlu0 %10206 }
 0x505   :  { %10380 = vmatmul.mubr.f32.vlgmr.msra.gmra.mrb[0].mxu0 %v14948_v12  ;;  %v11237_v37 = vand.u32 4294901760, %v11236_v4  ;;  %v10212_v39 = vsel %vm250_vm13, %v14930_v47, %v10207_v8 }
 0x506   :  { %10391 = vmatpush1.msra.mxu0 %v14974_v27  ;;  %10454 = vmatprep.mubr.f32.mxu0 %v13872_v7 }
 0x507   :  { %10464 = vmatprep.subr.mxu0 %v14952_v21 }
 0x508   :  { %8027 = vmatmul.mubr.f32.vlgmr.msra.gmra.mrb[2].mxu1 %v14626_v3  ;;  %v11612_v11 = vpop.permute.xlu0 %11611 }
 0x509   :  { %8038 = vmatpush1.msra.mxu1 %v7958_v36  ;;  %8101 = vmatprep.mubr.f32.mxu1 %v13872_v7  ;;  %v11620_v15 = vsel %vm275_vm14, %v11612_v11, %v15092_v42 }
 0x50a   :  { %8111 = vmatprep.subr.mxu1 %v14945_v43 }
 0x50d   :  { %10457 = vmatmul.mubr.f32.vlgmr.msra.gmra.mrb[0].mxu0 %v14968_v30 }
 0x50e   :  { %10466 = vmatpush1.msra.mxu0 %v14964_v54  ;;  %10529 = vmatprep.mubr.f32.mxu0 %v13872_v7 }
 0x50f   :  { %10542 = vmatprep.subr.mxu0 %v10306_v5 }
 0x510   :  { %8104 = vmatmul.mubr.f32.vlgmr.msra.gmra.mrb[2].mxu1 %v14641_v9  ;;  %v15031_v9 = vand.u32 4294901760, %v8813_v61 }
 0x511   :  { %8113 = vmatpush1.msra.mxu1 %v14971_v35  ;;  %8176 = vmatprep.mubr.f32.mxu1 %v13872_v7 }
 0x512   :  { %8189 = vmatprep.subr.mxu1 %v7953_v23  ;;  %v15042_v26 = vsub.f32 %v8813_v61, %v15031_v9 }
 0x514   :  { %v9362_v62 = vand.u32 4294901760, %v15042_v26 }
 0x515   :  { %10533 = vmatmul.mubr.f32.vlgmr.msra.gmra.mrb[0].mxu0 %v14979_v25 }
 0x516   :  { %10546 = vmatpush1.msra.mxu0 %v10312_v38  ;;  %10609 = vmatprep.mubr.f32.mxu0 %v13872_v7  ;;  %v9363_v20 = vsub.f32 %v15042_v26, %v9362_v62 }
 0x517   :  { %10618 = vmatprep.subr.mxu0 %v14952_v21  ;;  %v11627_v21 = vsel %vm315_vm15, %v11620_v15, 0 }
 0x518   :  { %8180 = vmatmul.mubr.f32.vlgmr.msra.gmra.mrb[2].mxu1 %v14649_v55  ;;  %v15050_v55 = vand.u32 4294901760, %v8811_v63  ;;  %v9364_v53 = vand.u32 4294901760, %v9363_v20  ;;  %v15116_v41 = vand.u32 4294901760, %v11627_v21 }
 0x519   :  { %8193 = vmatpush1.msra.mxu1 %v7959_v48  ;;  %8256 = vmatprep.mubr.f32.mxu1 %v13872_v7 }
 0x51a   :  { %8265 = vmatprep.subr.mxu1 %v14945_v43  ;;  %v15060_v60 = vsub.f32 %v8811_v63, %v15050_v55  ;;  %v11714_v5 = vsub.f32 %v11627_v21, %v15116_v41  ;;  %v11616_v63 = vpop.permute.xlu1 %11615 }
 0x51c   :  { %v9368_v59 = vand.u32 4294901760, %v15060_v60  ;;  %v11715_v50 = vand.u32 4294901760, %v11714_v5 }
 0x51d   :  { %10611 = vmatmul.mubr.f32.vlgmr.msra.gmra.mrb[0].mxu0 %v14948_v12 }
 0x51e   :  { %10620 = vmatpush1.msra.mxu0 %v14964_v54  ;;  %10683 = vmatprep.mubr.f32.mxu0 %v13872_v7  ;;  %v9369_v10 = vsub.f32 %v15060_v60, %v9368_v59  ;;  %v15114_v54 = vand.u32 4294901760, %v11623_v19  ;;  %v11716_v34 = vsub.f32 %v11714_v5, %v11715_v50 }
 0x51f   :  { %13449 = vmatprep.subr.mxu0 %v13872_v7 }
 0x520   :  { %8258 = vmatmul.mubr.f32.vlgmr.msra.gmra.mrb[2].mxu1 %v14626_v3  ;;  %v9370_v6 = vand.u32 4294901760, %v9369_v10  ;;  %v15132_v23 = vsub.f32 %v11623_v19, %v15114_v54  ;;  %v11717_v49 = vand.u32 4294901760, %v11716_v34 }
 0x521   :  { %8267 = vmatpush1.msra.mxu1 %v14971_v35  ;;  %8330 = vmatprep.mubr.f32.mxu1 %v13872_v7  ;;  %v10213_v35 = vsel %vm250_vm13, %v10207_v8, %v15023_v31 }
 0x522   :  { %9283 = vmatprep.subr.mxu1 %v15031_v9  ;;  %v10222_v27 = vsel %vm315_vm15, %v10213_v35, 0  ;;  %v15144_v45 = vand.u32 4294901760, %v15132_v23 }
 0x523   :  { %v15135_v36 = vand.u32 4294901760, %v10222_v27 }
 0x524   :  { %v11705_v29 = vsub.f32 %v15132_v23, %v15144_v45 }
 0x525   :  { %10685 = vmatmul.mubr.f32.vlgmr.msra.gmra.mrb[0].mxu0 %v14948_v12  ;;  %v10770_v47 = vsub.f32 %v10222_v27, %v15135_v36 }
 0x526   :  { %13450 = vmatpush3.msra.mxu0 %v15033_v24  ;;  %13451 = vmatprep.mubr.msk.f32.mxu0 %vm13893_vm2, %v13872_v7  ;;  %v15166_v17 = vand.u32 4294901760, %v11705_v29 }
 0x527   :  { %13454 = vmatprep.subr.mxu0 %v13872_v7  ;;  %v10771_v57 = vand.u32 4294901760, %v10770_v47 }
 0x528   :  { %8332 = vmatmul.mubr.f32.vlgmr.msra.gmra.mrb[2].mxu1 %v14626_v3 }
 0x529   :  { %9285 = vmatpush1.msra.mxu1 %v15050_v55  ;;  %13452 = vmatmul.mubr.f32.vlgmr.msra.gmra.mrb[2].mxu0 %v14998_v51  ;;  %v10772_v61 = vsub.f32 %v10770_v47, %v10771_v57 }
 0x52a   :  { %13455 = vmatpush3.msra.mxu0 %v11237_v37  ;;  %9365 = vmatprep.subr.mxu1 %v9364_v53 }
 0x52b   :  { %v15075_v14 = vpop.f32.mrb[4].mxu1  ;;  %9348 = vmatprep.mubr.f32.mxu1 %v13872_v7  ;;  %13456 = vmatprep.mubr.msk.f32.mxu0 %vm13893_vm2, %v13872_v7 }
 0x52c   :  { %v13298_v3 = vpop.f32.mrb[5].mxu1  ;;  %13459 = vmatprep.subr.mxu0 %v13872_v7 }
 0x530   :  { %9354 = vmatmul.mubr.f32.vlgmr.msra.gmra.mrb[2].mxu1 %v14839_v58  ;;  %v11610_v58 = vpop.permute.xlu0 %11609 }
 0x531   :  { %9371 = vmatpush1.msra.mxu1 %v9370_v6  ;;  %13457 = vmatmul.mubr.f32.vlgmr.msra.gmra.mrb[2].mxu0 %v14948_v12  ;;  %v11619_v43 = vsel %vm275_vm14, %v11610_v58, %v11612_v11 }
 0x532   :  { %13460 = vmatpush3.msra.mxu0 %v15045_v1  ;;  %9444 = vmatprep.subr.mxu1 %v15042_v26  ;;  %v11625_v40 = vsel %vm315_vm15, %v11619_v43, 0  ;;  %v13019_v43 = vshrl.u32 %v44_v13, 7 }
 0x533   :  { %9434 = vmatprep.mubr.f32.mxu1 %v13872_v7  ;;  %13461 = vmatprep.mubr.msk.f32.mxu0 %vm13893_vm2, %v13872_v7 }
 0x534   :  { %13464 = vmatprep.subr.mxu0 %v13872_v7  ;;  %v13024_v35 = vsub.s32 1, %v13019_v43  ;;  %v13036_v27 = vsub.s32 4, %v13019_v43 }
 0x538   :  { %9436 = vmatmul.mubr.f32.vlgmr.msra.gmra.mrb[2].mxu1 %v14794_v16 }
 0x539   :  { %9447 = vmatpush1.msra.mxu1 %v15060_v60  ;;  %13462 = vmatmul.mubr.f32.vlgmr.msra.gmra.mrb[2].mxu0 %v14968_v30  ;;  %v11621_v60 = vsel %vm275_vm14, %v15092_v42, %v11616_v63 }
 0x53a   :  { %13465 = vmatpush3.msra.mxu0 %v15033_v24  ;;  %9520 = vmatprep.subr.mxu1 %v15031_v9  ;;  %v11629_v20 = vsel %vm315_vm15, %v11621_v60, 0 }
 0x53b   :  { %9510 = vmatprep.mubr.f32.mxu1 %v13872_v7  ;;  %13466 = vmatprep.mubr.msk.f32.mxu0 %vm13893_vm2, %v13872_v7 }
 0x53c   :  { %13469 = vmatprep.subr.mxu0 %v13872_v7 }
 0x53f   :  { %v15108_v28 = vpop.f32.mrb[0].mxu1 }
 0x540   :  { %v15110_v56 = vpop.f32.mrb[1].mxu1  ;;  %9513 = vmatmul.mubr.f32.vlgmr.msra.gmra.mrb[2].mxu1 %v14814_v32  ;;  %v15127_v32 = vand.u32 4294901760, %v11625_v40 }
 0x541   :  { %9522 = vmatpush1.msra.mxu1 %v15050_v55  ;;  %13467 = vmatmul.mubr.f32.vlgmr.msra.gmra.mrb[2].mxu0 %v14979_v25 }
 0x542   :  { %13470 = vmatpush3.msra.mxu0 %v11235_v2  ;;  %9598 = vmatprep.subr.mxu1 %v9362_v62  ;;  %v15138_v38 = vsub.f32 %v11625_v40, %v15127_v32 }
 0x543   :  { %9585 = vmatprep.mubr.f32.mxu1 %v13872_v7  ;;  %13471 = vmatprep.mubr.msk.f32.mxu0 %vm13893_vm2, %v13872_v7 }
 0x544   :  { %13474 = vmatprep.subr.mxu0 %v13872_v7  ;;  %v11721_v48 = vand.u32 4294901760, %v15138_v38 }
 0x546   :  { %v11722_v46 = vsub.f32 %v15138_v38, %v11721_v48 }
 0x548   :  { %9589 = vmatmul.mubr.f32.vlgmr.msra.gmra.mrb[2].mxu1 %v14823_v0  ;;  %v10220_v0 = vsel %vm315_vm15, %v10212_v39, 0  ;;  %v11723_v31 = vand.u32 4294901760, %v11722_v46 }
 0x549   :  { %9602 = vmatpush1.msra.mxu1 %v9368_v59  ;;  %13472 = vmatmul.mubr.f32.vlgmr.msra.gmra.mrb[2].mxu0 %v14948_v12  ;;  %v15160_v44 = vand.u32 4294901760, %v10220_v0 }
 0x54a   :  { %13475 = vmatpush3.msra.mxu0 %v15033_v24  ;;  %9674 = vmatprep.subr.mxu1 %v15031_v9  ;;  %v10773_v9 = vand.u32 4294901760, %v10772_v61 }
 0x54b   :  { %11636 = vmatprep.subr.mxu0 %v15116_v41  ;;  %9665 = vmatprep.mubr.f32.mxu1 %v13872_v7  ;;  %v10776_v33 = vsub.f32 %v10220_v0, %v15160_v44 }
 0x54c   :  { %13476 = vmatprep.mubr.msk.f32.mxu0 %vm13893_vm2, %v13872_v7 }
 0x54d   :  { %v10777_v22 = vand.u32 4294901760, %v10776_v33 }
 0x54f   :  { %v10778_v24 = vsub.f32 %v10776_v33, %v10777_v22 }
 0x550   :  { %9667 = vmatmul.mubr.f32.vlgmr.msra.gmra.mrb[2].mxu1 %v14794_v16 }
 0x551   :  { %9676 = vmatpush1.msra.mxu1 %v15050_v55  ;;  %13477 = vmatmul.mubr.f32.vlgmr.msra.gmra.mrb[2].mxu0 %v14948_v12  ;;  %v10779_v18 = vand.u32 4294901760, %v10778_v24 }
 0x552   :  { %11638 = vmatpush1.msra.mxu0 %v15127_v32  ;;  %10692 = vmatprep.subr.mxu1 %v15135_v36 }
 0x553   :  { %11718 = vmatprep.subr.mxu0 %v11717_v49  ;;  %11701 = vmatprep.mubr.f32.mxu0 %v13872_v7 }
 0x554   :  { %9739 = vmatprep.mubr.f32.mxu1 %v13872_v7 }
 0x555   :  { %11707 = vmatmul.mubr.f32.vlgmr.msra.gmra.mrb[0].mxu0 %v15166_v17 }
 0x556   :  { %11724 = vmatpush1.msra.mxu0 %v11723_v31  ;;  %11787 = vmatprep.mubr.f32.mxu0 %v13872_v7 }
 0x557   :  { %11797 = vmatprep.subr.mxu0 %v11714_v5 }
 0x558   :  { %9741 = vmatmul.mubr.f32.vlgmr.msra.gmra.mrb[2].mxu1 %v14794_v16  ;;  %v11618_v16 = vpop.permute.xlu0 %11617 }
 0x559   :  { %10694 = vmatpush1.msra.mxu1 %v15160_v44  ;;  %10757 = vmatprep.mubr.f32.mxu1 %v13872_v7  ;;  %v11622_v1 = vsel %vm275_vm14, %v11616_v63, %v11618_v16 }
 0x55a   :  { %10774 = vmatprep.subr.mxu1 %v10773_v9  ;;  %v11631_v2 = vsel %vm315_vm15, %v11622_v1, 0 }
 0x55b   :  { %v15206_v62 = vand.u32 4294901760, %v11631_v2 }
 0x55d   :  { %11789 = vmatmul.mubr.f32.vlgmr.msra.gmra.mrb[0].mxu0 %v15114_v54  ;;  %v12179_v59 = vsub.f32 %v11631_v2, %v15206_v62 }
 0x55e   :  { %11800 = vmatpush1.msra.mxu0 %v15138_v38  ;;  %11863 = vmatprep.mubr.f32.mxu0 %v13872_v7 }
 0x55f   :  { %11873 = vmatprep.subr.mxu0 %v15116_v41  ;;  %v12180_v53 = vand.u32 4294901760, %v12179_v59 }
 0x560   :  { %10763 = vmatmul.mubr.f32.vlgmr.msra.gmra.mrb[2].mxu1 %v14998_v51  ;;  %v11633_v51 = vsel %vm315_vm15, %v11618_v16, 0 }
 0x561   :  { %10780 = vmatpush1.msra.mxu1 %v10779_v18  ;;  %10843 = vmatprep.mubr.f32.mxu1 %v13872_v7  ;;  %v15194_v26 = vand.u32 4294901760, %v11633_v51  ;;  %v12181_v3 = vsub.f32 %v12179_v59, %v12180_v53 }
 0x562   :  { %10853 = vmatprep.subr.mxu1 %v10770_v47 }
 0x563   :  { %v12643_v55 = vsub.f32 %v11633_v51, %v15194_v26  ;;  %v12182_v6 = vand.u32 4294901760, %v12181_v3 }
 0x565   :  { %11866 = vmatmul.mubr.f32.vlgmr.msra.gmra.mrb[0].mxu0 %v15132_v23 }
 0x566   :  { %11875 = vmatpush1.msra.mxu0 %v15127_v32  ;;  %11938 = vmatprep.mubr.f32.mxu0 %v13872_v7 }
 0x567   :  { %11951 = vmatprep.subr.mxu0 %v11715_v50 }
 0x568   :  { %10845 = vmatmul.mubr.f32.vlgmr.msra.gmra.mrb[2].mxu1 %v14948_v12 }
 0x569   :  { %10856 = vmatpush1.msra.mxu1 %v10776_v33  ;;  %10919 = vmatprep.mubr.f32.mxu1 %v13872_v7 }
 0x56a   :  { %10929 = vmatprep.subr.mxu1 %v15135_v36 }
 0x56d   :  { %11942 = vmatmul.mubr.f32.vlgmr.msra.gmra.mrb[0].mxu0 %v15144_v45 }
 0x56e   :  { %11955 = vmatpush1.msra.mxu0 %v11721_v48  ;;  %12018 = vmatprep.mubr.f32.mxu0 %v13872_v7 }
 0x56f   :  { %12027 = vmatprep.subr.mxu0 %v15116_v41  ;;  %v13020_v41 = vsub.s32 0, %v13019_v43 }
 0x570   :  { %10922 = vmatmul.mubr.f32.vlgmr.msra.gmra.mrb[2].mxu1 %v14968_v30  ;;  %v12644_v30 = vand.u32 4294901760, %v12643_v55 }
 0x571   :  { %10931 = vmatpush1.msra.mxu1 %v15160_v44  ;;  %10994 = vmatprep.mubr.f32.mxu1 %v13872_v7 }
 0x572   :  { %11007 = vmatprep.subr.mxu1 %v10771_v57  ;;  %v12645_v4 = vsub.f32 %v12643_v55, %v12644_v30 }
 0x574   :  { %v12646_v37 = vand.u32 4294901760, %v12645_v4  ;;  %v13076_v4 = vld [vmem:[%s15305_s6] sm:$0xff] }
 0x575   :  { %12020 = vmatmul.mubr.f32.vlgmr.msra.gmra.mrb[0].mxu0 %v15114_v54 }
 0x576   :  { %12029 = vmatpush1.msra.mxu0 %v15127_v32  ;;  %12092 = vmatprep.mubr.f32.mxu0 %v13872_v7 }
 0x577   :  { %13479 = vmatprep.subr.mxu0 %v13872_v7 }
 0x578   :  { %10998 = vmatmul.mubr.f32.vlgmr.msra.gmra.mrb[2].mxu1 %v14979_v25  ;;  %v12102_v25 = vand.u32 4294901760, %v11629_v20 }
 0x579   :  { %11011 = vmatpush1.msra.mxu1 %v10777_v22  ;;  %11074 = vmatprep.mubr.f32.mxu1 %v13872_v7 }
 0x57a   :  { %11083 = vmatprep.subr.mxu1 %v15135_v36  ;;  %v12185_v10 = vsub.f32 %v11629_v20, %v12102_v25 }
 0x57c   :  { %v12186_v8 = vand.u32 4294901760, %v12185_v10 }
 0x57d   :  { %12094 = vmatmul.mubr.f32.vlgmr.msra.gmra.mrb[0].mxu0 %v15114_v54 }
 0x57e   :  { %13480 = vmatpush3.msra.mxu0 %v15194_v26  ;;  %13481 = vmatprep.mubr.msk.f32.mxu0 %vm13893_vm2, %v13872_v7  ;;  %v12187_v52 = vsub.f32 %v12185_v10, %v12186_v8 }
 0x57f   :  { %13484 = vmatprep.subr.mxu0 %v13872_v7 }
 0x580   :  { %11076 = vmatmul.mubr.f32.vlgmr.msra.gmra.mrb[2].mxu1 %v14948_v12  ;;  %v12188_v11 = vand.u32 4294901760, %v12187_v52 }
 0x581   :  { %11085 = vmatpush1.msra.mxu1 %v15160_v44  ;;  %13482 = vmatmul.mubr.f32.vlgmr.msra.gmra.mrb[2].mxu0 %v15166_v17 }
 0x582   :  { %13485 = vmatpush3.msra.mxu0 %v12646_v37  ;;  %12101 = vmatprep.subr.mxu1 %v15206_v62 }
 0x583   :  { %11148 = vmatprep.mubr.f32.mxu1 %v13872_v7  ;;  %13486 = vmatprep.mubr.msk.f32.mxu0 %vm13893_vm2, %v13872_v7 }
 0x584   :  { %13489 = vmatprep.subr.mxu0 %v13872_v7 }
 0x588   :  { %11150 = vmatmul.mubr.f32.vlgmr.msra.gmra.mrb[2].mxu1 %v14948_v12 }
 0x589   :  { %12103 = vmatpush1.msra.mxu1 %v12102_v25  ;;  %13487 = vmatmul.mubr.f32.vlgmr.msra.gmra.mrb[2].mxu0 %v15114_v54 }
 0x58a   :  { %13490 = vmatpush3.msra.mxu0 %v12643_v55  ;;  %12183 = vmatprep.subr.mxu1 %v12182_v6 }
 0x58b   :  { %12166 = vmatprep.mubr.f32.mxu1 %v13872_v7  ;;  %13491 = vmatprep.mubr.msk.f32.mxu0 %vm13893_vm2, %v13872_v7 }
 0x58c   :  { %13494 = vmatprep.subr.mxu0 %v13872_v7 }
 0x590   :  { %12172 = vmatmul.mubr.f32.vlgmr.msra.gmra.mrb[2].mxu1 %v15166_v17 }
 0x591   :  { %12189 = vmatpush1.msra.mxu1 %v12188_v11  ;;  %13492 = vmatmul.mubr.f32.vlgmr.msra.gmra.mrb[2].mxu0 %v15132_v23 }
 0x592   :  { %13495 = vmatpush3.msra.mxu0 %v15194_v26  ;;  %12262 = vmatprep.subr.mxu1 %v12179_v59 }
 0x593   :  { %12252 = vmatprep.mubr.f32.mxu1 %v13872_v7  ;;  %13496 = vmatprep.mubr.msk.f32.mxu0 %vm13893_vm2, %v13872_v7 }
 0x594   :  { %13499 = vmatprep.subr.mxu0 %v13872_v7 }
 0x598   :  { %12254 = vmatmul.mubr.f32.vlgmr.msra.gmra.mrb[2].mxu1 %v15114_v54 }
 0x599   :  { %12265 = vmatpush1.msra.mxu1 %v12185_v10  ;;  %13497 = vmatmul.mubr.f32.vlgmr.msra.gmra.mrb[2].mxu0 %v15144_v45 }
 0x59a   :  { %13500 = vmatpush3.msra.mxu0 %v12644_v30  ;;  %12338 = vmatprep.subr.mxu1 %v15206_v62  ;;  %v13072_v30 = vld [vmem:[%s15304_s5] sm:$0xff] }
 0x59b   :  { %12328 = vmatprep.mubr.f32.mxu1 %v13872_v7  ;;  %13501 = vmatprep.mubr.msk.f32.mxu0 %vm13893_vm2, %v13872_v7 }
 0x59c   :  { %13504 = vmatprep.subr.mxu0 %v13872_v7 }
 0x5a0   :  { %12331 = vmatmul.mubr.f32.vlgmr.msra.gmra.mrb[2].mxu1 %v15132_v23  ;;  %v13032_v23 = vsub.s32 3, %v13019_v43 }
 0x5a1   :  { %12340 = vmatpush1.msra.mxu1 %v12102_v25  ;;  %13502 = vmatmul.mubr.f32.vlgmr.msra.gmra.mrb[2].mxu0 %v15114_v54 }
 0x5a2   :  { %13505 = vmatpush3.msra.mxu0 %v15194_v26  ;;  %12416 = vmatprep.subr.mxu1 %v12180_v53 }
 0x5a3   :  { %12403 = vmatprep.mubr.f32.mxu1 %v13872_v7  ;;  %13506 = vmatprep.mubr.msk.f32.mxu0 %vm13893_vm2, %v13872_v7 }
 0x5a8   :  { %12407 = vmatmul.mubr.f32.vlgmr.msra.gmra.mrb[2].mxu1 %v15144_v45 }
 0x5a9   :  { %12420 = vmatpush1.msra.mxu1 %v12186_v8  ;;  %13507 = vmatmul.mubr.f32.vlgmr.msra.gmra.mrb[2].mxu0 %v15114_v54 }
 0x5aa   :  { %12492 = vmatprep.subr.mxu1 %v15206_v62  ;;  %12483 = vmatprep.mubr.f32.mxu1 %v13872_v7 }
 0x5b0   :  { %12485 = vmatmul.mubr.f32.vlgmr.msra.gmra.mrb[2].mxu1 %v15114_v54 }
 0x5b1   :  { %12494 = vmatpush1.msra.mxu1 %v12102_v25  ;;  %12557 = vmatprep.mubr.f32.mxu1 %v13872_v7  ;;  %v13016_v7 = vld [vmem:[%s15303_s7] sm:$0x1f] }
 0x5b2   :  { %v13025_v32 = vrot.slane %v13016_v7, %v13024_v35  ;;  %v13037_v36 = vrot.slane %v13016_v7, %v13036_v27  ;;  %v13033_v38 = vrot.slane %v13016_v7, %v13032_v23 }
 0x5b8   :  { %12559 = vmatmul.mubr.f32.vlgmr.msra.gmra.mrb[2].mxu1 %v15114_v54  ;;  %v13021_v54 = vrot.slane %v13016_v7, %v13020_v41 }
 0x650   :  { %v12095_v12 = vpop.f32.mrb[0].mxu0 }
 0x651   :  { %v15262_v42 = vadd.f32 %v12095_v12, %v15108_v28  ;;  %v12097_v58 = vpop.f32.mrb[1].mxu0  ;;  %v13028_v28 = vsub.s32 2, %v13019_v43 }
 0x652   :  { %v13510_v15 = vadd.f32 %v12097_v58, %v15110_v56 }
 0x653   :  { %v13043_v5 = vmul.f32 %v15262_v42, %v13021_v54  ;;  %v13029_v13 = vrot.slane %v13016_v7, %v13028_v28 }
 0x654   :  { %v13044_v56 = vmul.f32 %v13510_v15, %v13025_v32 }
 0x656   :  { %v13056_v39 = vmul.f32 %v13510_v15, %v13044_v56  ;;  %v13048_v0 = vadd.f32 %v13044_v56, %v13043_v5 }
 0x67c   :  { %v13007_v19 = vpop.f32.mrb[2].mxu0 }
 0x67d   :  { %v13511_v21 = vadd.f32 %v13007_v19, %v15075_v14  ;;  %v13508_v40 = vpop.f32.mrb[3].mxu0  ;;  %v13055_v14 = vmul.f32 %v15262_v42, %v13043_v5 }
 0x67f   :  { %v13047_v45 = vmul.f32 %v13511_v21, %v13037_v36  ;;  %v13060_v29 = vadd.f32 %v13056_v39, %v13055_v14 }
 0x681   :  { %v13059_v49 = vmul.f32 %v13511_v21, %v13047_v45  ;;  %v13051_v31 = vsel %vm352_vm0, %v13047_v45, 0.0 }
 0x683   :  { %v13063_v9 = vsel %vm352_vm0, %v13059_v49, 0.0 }
 0x68b   :  { %v12560_v50 = vpop.f32.mrb[2].mxu1 }
 0x68c   :  { %v13045_v47 = vmul.f32 %v13029_v13, %v12560_v50  ;;  %v12562_v48 = vpop.f32.mrb[3].mxu1 }
 0x68d   :  { %v13046_v34 = vmul.f32 %v13033_v38, %v12562_v48 }
 0x68e   :  { %v13049_v44 = vadd.f32 %v13048_v0, %v13045_v47  ;;  %v13057_v46 = vmul.f32 %v13045_v47, %v12560_v50 }
 0x68f   :  { %v13058_v57 = vmul.f32 %v13046_v34, %v12562_v48 }
 0x690   :  { %v13050_v17 = vadd.f32 %v13049_v44, %v13046_v34  ;;  %v13061_v33 = vadd.f32 %v13060_v29, %v13057_v46 }
 0x692   :  { %v13052_v61 = vadd.f32 %v13051_v31, %v13050_v17  ;;  %v13062_v22 = vadd.f32 %v13061_v33, %v13058_v57 }
 0x694   :  { %13053 = vadd.xlane.f32.xlu1 %v13052_v61  ;;  %v13064_v24 = vadd.f32 %v13063_v9, %v13062_v22 }
 0x696   :  { %13065 = vadd.xlane.f32.xlu0 %v13064_v24 }
 0x721   :  { %v13054_v18 = vpop.xlane.xlu1 %13053 }
 0x722   :  { %v13067_v16 = vmul.f32 0.0025510204, %v13054_v18 }
 0x723   :  { %v13066_v51 = vpop.xlane.xlu0 %13065 }
 0x724   :  { %v13069_v63 = vmul.f32 %v13067_v16, %v13067_v16  ;;  %v13068_v26 = vmul.f32 0.0025510204, %v13066_v51 }
 0x726   :  { %v13070_v1 = vsub.f32 %v13068_v26, %v13069_v63 }
 0x728   :  { %v13071_v55 = vmax.f32 %v13070_v1, 0.0 }
 0x72a   :  { %v13073_v2 = vadd.f32 1e-05, %v13071_v55 }
 0x72c   :  { %13865 = vrsqrt.f32 %v13073_v2 }
 0x736   :  { %v13866_v62 = vpop.eup %13865 }
 0x737   :  { %v13075_v60 = vmul.f32 %v13866_v62, %v13072_v30 }
 0x739   :  { %13081 = vperm.xlu0 %13862, %v13075_v60   ;;  %v13077_v20 = vmul.f32 %v13075_v60, %v13067_v16 }
 0x73b   :  { %v13078_v59 = vsub.f32 %v13076_v4, %v13077_v20 }
 0x73d   :  { %13088 = vperm.xlu1 %13861, %v13078_v59  }
 0x7b8   :  { %v13082_v25 = vpop.permute.xlu0 %13081 }
 0x7b9   :  { %v13084_v37 = vmul.f32 %v15262_v42, %v13082_v25  ;;  %v13085_v53 = vmul.f32 %v13510_v15, %v13082_v25  ;;  %v13097_v10 = vmul.f32 %v13082_v25, %v12560_v50  ;;  %v13098_v3 = vmul.f32 %v13082_v25, %v12562_v48 }
 0x7ba   :  { %v13099_v8 = vmul.f32 %v13511_v21, %v13082_v25 }
 0x7bc   :  { %v13089_v6 = vpop.permute.xlu1 %13088 }
 0x7bd   :  { %v13091_v52 = vadd.f32 %v13089_v6, %v13084_v37  ;;  %v13092_v11 = vadd.f32 %v13089_v6, %v13085_v53  ;;  %v13101_v12 = vadd.f32 %v13098_v3, %v13089_v6  ;;  %v13100_v58 = vadd.f32 %v13097_v10, %v13089_v6 }
 0x7be   :  { %v13102_v43 = vadd.f32 %v13099_v8, %v13089_v6 }
 0x7bf   :  { %v13093_v19 = vmax.f32 %v13091_v52, 0.0  ;;  %v13094_v40 = vmax.f32 %v13092_v11, 0.0  ;;  %v13104_v41 = vmax.f32 %v13101_v12, 0.0  ;;  %v13103_v35 = vmax.f32 %v13100_v58, 0.0 }
 0x7c0   :  { %v13105_v42 = vmax.f32 %v13102_v43, 0.0 }
 0x7c1   :  { %13111 = vrot.lane.b32.xlu0 %v13104_v41, %s13885_s17  ;;  %13109 = vrot.lane.b32.xlu1 %v13103_v35, %s13885_s17  ;;  %13095 = vst [vmem:[%s15306_s8] sm:$0xff] %v13093_v19  ;;  %13096 = vst [vmem:[%s15306_s8 + $0x8] sm:$0xff] %v13094_v40 }
 0x7c5   :  { %13113 = vrot.lane.b32.xlu1 %v13105_v42, %s13885_s17 }
 0x833   :  { %v13112_v15 = vpop.permute.xlu0 %13111  ;;  %v13110_v21 = vpop.permute.xlu1 %13109 }
 0x834   :  { %v13115_v7 = vsel %vm275_vm14, %v13110_v21, %v13112_v15 }
 0x835   :  { %13119 = vst [vmem:[%s15306_s8 + $0x10] sm:$0xff] %v13115_v7 }
 0x837   :  { %v13114_v54 = vpop.permute.xlu1 %13113 }
 0x838   :  { %v13116_v32 = vsel %vm275_vm14, %v13112_v15, %v13114_v54 }
 0x839   :  { %13120 = vst [vmem:[%s15306_s8 + $0x18] sm:$0xff] %v13116_v32 }

</bundles_post_ra>
